<compile_context>
chip_gen: v5e
topology: v5e:2x2
jax: 0.10.0
libtpu: 0.0.40
codegen_flags: <defaults>
</compile_context>

<pallas_src>
import jax
import jax.numpy as jnp
from jax.experimental import pallas as pl
from jax.experimental.pallas import tpu as pltpu


# ---------------------------------------------------------------------------
# Stage A: GRU cell + 'general' attention + tanh(concat)  (single invocation)
# ---------------------------------------------------------------------------
def gru_attn_concat_kernel(
        x_ref, h0_ref, enc_ref,
        wih_r_ref, wih_z_ref, wih_n_ref,
        whh_r_ref, whh_z_ref, whh_n_ref,
        b_r_ref, b_z_ref, b_in_ref, b_hn_ref,
        wa_ref, ba_ref,
        wc_h_ref, wc_c_ref, b_cat_ref,
        hid_ref, attn_ref, concat_ref):
    bf16 = jnp.bfloat16
    x = x_ref[...]                      # (B, Hp) f32 embedded token (dropout = identity, eval)
    h_prev = h0_ref[...]                # (B, Hp) f32
    x16 = x.astype(bf16)
    h16 = h_prev.astype(bf16)

    def mm(a16, w_ref):                 # bf16 x bf16 -> f32 accumulation on the MXU
        return jnp.dot(a16, w_ref[...], preferred_element_type=jnp.float32)

    # ---- GRU cell, per-gate matmuls (PyTorch gate order: r, z, n) ----
    r = jax.nn.sigmoid(mm(x16, wih_r_ref) + mm(h16, whh_r_ref) + b_r_ref[...])
    z = jax.nn.sigmoid(mm(x16, wih_z_ref) + mm(h16, whh_z_ref) + b_z_ref[...])
    n = jnp.tanh(mm(x16, wih_n_ref) + b_in_ref[...]
                 + r * (mm(h16, whh_n_ref) + b_hn_ref[...]))
    h_new = (1.0 - z) * n + z * h_prev                     # (B, Hp) f32
    hid_ref[...] = h_new

    # ---- Attn 'general':  score = h.(W_a e + b_a) = (h @ W_a).e + h.b_a ----
    enc = enc_ref[...]                                     # (B, L, Hp) f32
    q = mm(h_new.astype(bf16), wa_ref)                     # (B, Hp) f32
    scores = jnp.sum(q[:, None, :] * enc, axis=-1)         # (B, L)  VPU mul + lane reduce
    bias = jnp.sum(h_new * ba_ref[...], axis=-1, keepdims=True)          # (B, 1)
    energies = scores + bias

    # softmax over L (old F.softmax default dim=1 for a 2-D tensor)
    m = jnp.max(energies, axis=-1, keepdims=True)
    e = jnp.exp(energies - m)
    attn = e / jnp.sum(e, axis=-1, keepdims=True)          # (B, L)
    attn_ref[...] = attn

    # ---- context = attn @ enc (batched MXU matmul) ----
    context = jnp.einsum('bql,blh->bqh', attn[:, None, :], enc,
                         preferred_element_type=jnp.float32)[:, 0, :]    # (B, Hp)

    # ---- tanh(Linear([h; c])) without an in-kernel concatenate ----
    concat = jnp.tanh(mm(h_new.astype(bf16), wc_h_ref)
                      + mm(context.astype(bf16), wc_c_ref) + b_cat_ref[...])
    concat_ref[...] = concat.astype(concat_ref.dtype)      # bf16 hand-off to stage B


# ---------------------------------------------------------------------------
# Stage B: output projection, tiled over a fixed lane-dense vocab axis
# ---------------------------------------------------------------------------
def vocab_proj_kernel(concat_ref, w_out_ref, b_out_ref, logits_ref):
    logits_ref[...] = (jnp.dot(concat_ref[...], w_out_ref[...],
                               preferred_element_type=jnp.float32)
                       + b_out_ref[...])


# ---------------------------------------------------------------------------
# One-time (per-model) weight preparation — hoisted out of the per-token path.
# ---------------------------------------------------------------------------
def prepare_decoder_params(params, *, vocab_tile=1024):
    f32, bf16 = jnp.float32, jnp.bfloat16
    H = int(params["w_attn"].shape[0])
    V = int(params["w_out"].shape[0])

    H_pad = -(-H // 128) * 128                 # lane/MXU-aligned hidden (helps v5e most)
    TV = int(vocab_tile)                       # fixed big tile, never falls back to 128
    n_v_tiles = int(pl.cdiv(V, TV))
    V_pad = n_v_tiles * TV

    def pad_mat(w, rows, cols):
        return jnp.pad(w, ((0, rows - w.shape[0]), (0, cols - w.shape[1])))

    def pad_row(b, cols):
        return jnp.pad(b, (0, cols - b.shape[0])).reshape(1, cols)

    w_ih = params["w_ih"].astype(f32)
    w_hh = params["w_hh"].astype(f32)
    b_ih = params["b_ih"].astype(f32)
    b_hh = params["b_hh"].astype(f32)

    gih = [pad_mat(w_ih[i * H:(i + 1) * H].T, H_pad, H_pad).astype(bf16) for i in range(3)]
    ghh = [pad_mat(w_hh[i * H:(i + 1) * H].T, H_pad, H_pad).astype(bf16) for i in range(3)]

    return {
        "H": H, "V": V, "H_pad": H_pad, "V_pad": V_pad, "TV": TV, "n_v_tiles": n_v_tiles,
        "embedding": pad_mat(params["embedding"].astype(f32), V, H_pad),      # (V, H_pad)
        "wih_r": gih[0], "wih_z": gih[1], "wih_n": gih[2],
        "whh_r": ghh[0], "whh_z": ghh[1], "whh_n": ghh[2],
        "b_r": pad_row(b_ih[:H] + b_hh[:H], H_pad),
        "b_z": pad_row(b_ih[H:2 * H] + b_hh[H:2 * H], H_pad),
        "b_in": pad_row(b_ih[2 * H:], H_pad),
        "b_hn": pad_row(b_hh[2 * H:], H_pad),
        "wa": pad_mat(params["w_attn"].astype(f32), H_pad, H_pad).astype(bf16),
        "ba": pad_row(params["b_attn"].astype(f32), H_pad),
        "wc_h": pad_mat(params["w_cat"][:, :H].T.astype(f32), H_pad, H_pad).astype(bf16),
        "wc_c": pad_mat(params["w_cat"][:, H:].T.astype(f32), H_pad, H_pad).astype(bf16),
        "b_cat": pad_row(params["b_cat"].astype(f32), H_pad),
        "w_out_t": pad_mat(params["w_out"].astype(f32).T, H_pad, V_pad).astype(bf16),
        "b_out": pad_row(params["b_out"].astype(f32), V_pad),
    }


# ---------------------------------------------------------------------------
# Per-token forward (cheap activation glue + 2 pallas_calls)
# ---------------------------------------------------------------------------
def luong_attn_decoder_fwd(input_seq, last_hidden, encoder_outputs, prep):
    f32 = jnp.float32
    H, V = prep["H"], prep["V"]
    H_pad, V_pad = prep["H_pad"], prep["V_pad"]
    TV, n_v_tiles = prep["TV"], prep["n_v_tiles"]
    B = int(input_seq.shape[0])
    L = int(encoder_outputs.shape[0])
    B_pad = max(8, -(-B // 8) * 8)

    # Glue: embedding lookup (gather), layout, zero padding. Dropout = identity (eval mode).
    # TODO(synk): training-mode dropout (embedding_dropout / GRU dropout) not modeled.
    x = jnp.take(prep["embedding"], input_seq, axis=0)                      # (B, H_pad)
    x = jnp.pad(x, ((0, B_pad - B), (0, 0)))
    h0 = jnp.pad(last_hidden[0].astype(f32), ((0, B_pad - B), (0, H_pad - H)))
    enc = jnp.transpose(encoder_outputs, (1, 0, 2)).astype(f32)             # (B, L, H)
    enc = jnp.pad(enc, ((0, B_pad - B), (0, 0), (0, H_pad - H)))

    # ---- Stage A ----
    a_args = (x, h0, enc,
              prep["wih_r"], prep["wih_z"], prep["wih_n"],
              prep["whh_r"], prep["whh_z"], prep["whh_n"],
              prep["b_r"], prep["b_z"], prep["b_in"], prep["b_hn"],
              prep["wa"], prep["ba"],
              prep["wc_h"], prep["wc_c"], prep["b_cat"])
    a_flops = 2 * B_pad * H_pad * 9 * H_pad + 4 * B_pad * L * H_pad
    a_bytes = (sum(int(a.size) * a.dtype.itemsize for a in a_args)
               + B_pad * H_pad * 4 + B_pad * L * 4 + B_pad * H_pad * 2)
    hid_pad, attn_pad, concat_bf16 = pl.pallas_call(
        gru_attn_concat_kernel,
        out_shape=(jax.ShapeDtypeStruct((B_pad, H_pad), f32),          # new hidden
                   jax.ShapeDtypeStruct((B_pad, L), f32),              # attn weights
                   jax.ShapeDtypeStruct((B_pad, H_pad), jnp.bfloat16)),  # tanh(concat)
        compiler_params=pltpu.CompilerParams(vmem_limit_bytes=48 * 1024 * 1024),
        cost_estimate=pl.CostEstimate(flops=a_flops,
                                      transcendentals=B_pad * (4 * H_pad + L),
                                      bytes_accessed=a_bytes),
    )(*a_args)

    # ---- Stage B: vocab projection, fixed lane-dense TV tiles, parallel grid ----
    b_flops = 2 * B_pad * H_pad * V_pad
    b_bytes = (B_pad * H_pad * 2 + H_pad * V_pad * 2 + V_pad * 4 + B_pad * V_pad * 4)
    logits_pad = pl.pallas_call(
        vocab_proj_kernel,
        grid=(n_v_tiles,),
        in_specs=[pl.BlockSpec((B_pad, H_pad), lambda j: (0, 0)),      # tiny, re-used
                  pl.BlockSpec((H_pad, TV), lambda j: (0, j)),         # bf16 weight stream
                  pl.BlockSpec((1, TV), lambda j: (0, j))],
        out_specs=pl.BlockSpec((B_pad, TV), lambda j: (0, j)),
        out_shape=jax.ShapeDtypeStruct((B_pad, V_pad), f32),
        compiler_params=pltpu.CompilerParams(
            dimension_semantics=("parallel",),      # vocab tiles shard across TCs (v7x)
            vmem_limit_bytes=48 * 1024 * 1024),
        cost_estimate=pl.CostEstimate(flops=b_flops, transcendentals=0,
                                      bytes_accessed=b_bytes),
    )(concat_bf16, prep["w_out_t"], prep["b_out"])

    output = logits_pad[:B, :V]              # (B, V) raw logits (matches PyTorch: no softmax)
    hidden = hid_pad[None, :B, :H]           # (1, B, H)
    attn_weights = attn_pad[:B, None, :]     # (B, 1, L)
    return output, hidden, attn_weights


# ---------------------------------------------------------------------------
# Pure-JAX f32 reference of the PyTorch forward (for the correctness check)
# ---------------------------------------------------------------------------
def _reference_fwd(input_seq, last_hidden, encoder_outputs, p):
    x = jnp.take(p["embedding"], input_seq, axis=0)
    h_prev = last_hidden[0]
    H = x.shape[1]
    gi = x @ p["w_ih"].T + p["b_ih"]
    gh = h_prev @ p["w_hh"].T + p["b_hh"]
    r = jax.nn.sigmoid(gi[:, :H] + gh[:, :H])
    z = jax.nn.sigmoid(gi[:, H:2 * H] + gh[:, H:2 * H])
    n = jnp.tanh(gi[:, 2 * H:] + r * gh[:, 2 * H:])
    h_new = (1 - z) * n + z * h_prev
    enc = jnp.transpose(encoder_outputs, (1, 0, 2))                     # (B,L,H)
    proj = enc @ p["w_attn"].T + p["b_attn"]
    energies = jnp.einsum("bh,blh->bl", h_new, proj)
    attn = jax.nn.softmax(energies, axis=-1)
    context = jnp.einsum("bl,blh->bh", attn, enc)
    concat_out = jnp.tanh(jnp.concatenate([h_new, context], 1) @ p["w_cat"].T + p["b_cat"])
    out = concat_out @ p["w_out"].T + p["b_out"]
    return out, h_new[None], attn[:, None, :]


def make_params(key, hidden_size, output_size):
    H, V = hidden_size, output_size
    ks = jax.random.split(key, 12)
    u = lambda k, shape, scale: jax.random.uniform(k, shape, jnp.float32, -scale, scale)
    s = 1.0 / jnp.sqrt(H)
    return {
        "embedding": jax.random.normal(ks[0], (V, H), jnp.float32),
        "w_ih": u(ks[1], (3 * H, H), s), "w_hh": u(ks[2], (3 * H, H), s),
        "b_ih": u(ks[3], (3 * H,), s),   "b_hh": u(ks[4], (3 * H,), s),
        "w_attn": u(ks[5], (H, H), s),   "b_attn": u(ks[6], (H,), s),
        "w_cat": u(ks[7], (H, 2 * H), 1.0 / jnp.sqrt(2 * H)),
        "b_cat": u(ks[8], (H,), 1.0 / jnp.sqrt(2 * H)),
        "w_out": u(ks[9], (V, H), s),    "b_out": u(ks[10], (V,), s),
    }


if __name__ == "__main__":
    B, H, L, V = 2, 32, 8, 64   # batch, hidden_size, encoder max_len, output_size (vocab)
    key = jax.random.PRNGKey(0)
    k_in, k_h, k_enc, k_p = jax.random.split(key, 4)

    input_seq = jax.random.randint(k_in, (B,), 0, V, dtype=jnp.int32)
    last_hidden = jax.random.normal(k_h, (1, B, H), jnp.float32)
    encoder_outputs = jax.random.normal(k_enc, (L, B, H), jnp.float32)
    params = make_params(k_p, H, V)

    # Weight prep happens exactly once; the per-token step is a jitted closure over it.
    prep = prepare_decoder_params(params, vocab_tile=1024)
    decode_step = jax.jit(lambda i, h, e: luong_attn_decoder_fwd(i, h, e, prep))

    out, hidden, attn_w = jax.block_until_ready(
        decode_step(input_seq, last_hidden, encoder_outputs))

    ref_out, ref_hid, ref_attn = _reference_fwd(input_seq, last_hidden, encoder_outputs, params)
    assert out.shape == (B, V) and hidden.shape == (1, B, H) and attn_w.shape == (B, 1, L)
    # bf16 weight stream => loosened tolerance vs. the f32 reference.
    assert jnp.allclose(out, ref_out, atol=5e-2, rtol=5e-2)
    assert jnp.allclose(hidden, ref_hid, atol=5e-2, rtol=5e-2)
    assert jnp.allclose(attn_w, ref_attn, atol=5e-2, rtol=5e-2)

    print("KERNEL_OK")
</pallas_src>

<mosaic_0001>
module attributes {stable_mosaic.version = 11 : i64} {
  func.func @vocab_proj_kernel(%arg0: i32, %arg1: memref<8x128xbf16, #tpu.memory_space<vmem>>, %arg2: memref<128x1024xbf16, #tpu.memory_space<vmem>>, %arg3: memref<1x1024xf32, #tpu.memory_space<vmem>>, %arg4: memref<8x1024xf32, #tpu.memory_space<vmem>>) attributes {dimension_semantics = [#tpu.dimension_semantics<parallel>], iteration_bounds = array<i64: 1>, scalar_prefetch = 0 : i64, scratch_operands = 0 : i64, tpu.core_type = #tpu.core_type<tc>, window_params = [{pipeline_mode = #tpu.pipeline_mode<synchronous>, transform_indices = @transform_0, window_bounds = array<i64: 8, 128>}, {transform_indices = @transform_1, window_bounds = array<i64: 128, 1024>}, {transform_indices = @transform_2, window_bounds = array<i64: 1, 1024>}, {transform_indices = @transform_3, window_bounds = array<i64: 8, 1024>}]} {
    %c0 = arith.constant 0 : index
    %c0_0 = arith.constant 0 : index
    %0 = vector.load %arg1[%c0, %c0_0] : memref<8x128xbf16, #tpu.memory_space<vmem>>, vector<8x128xbf16>
    %c0_1 = arith.constant 0 : index
    %c0_2 = arith.constant 0 : index
    %1 = vector.load %arg2[%c0_1, %c0_2] : memref<128x1024xbf16, #tpu.memory_space<vmem>>, vector<128x1024xbf16>
    %cst = arith.constant dense<0.000000e+00> : vector<8x1024xf32>
    %2 = tpu.matmul %0, %1, %cst {dimension_numbers = #tpu.dot_dimension_numbers<[1], [0], [0], [1], [0, 0, 1, 1], [], []>} : vector<8x128xbf16>, vector<128x1024xbf16>, vector<8x1024xf32> -> vector<8x1024xf32>
    %c0_3 = arith.constant 0 : index
    %c0_4 = arith.constant 0 : index
    %3 = vector.load %arg3[%c0_3, %c0_4] : memref<1x1024xf32, #tpu.memory_space<vmem>>, vector<1x1024xf32>
    %4 = vector.broadcast %3 : vector<1x1024xf32> to vector<8x1024xf32>
    %5 = arith.addf %2, %4 : vector<8x1024xf32>
    %c0_5 = arith.constant 0 : index
    %c0_6 = arith.constant 0 : index
    %6 = vector.load %arg4[%c0_5, %c0_6] : memref<8x1024xf32, #tpu.memory_space<vmem>>, vector<8x1024xf32>
    tpu.vector_store %arg4[%c0_5, %c0_6], %5 {strides = array<i32>} : memref<8x1024xf32, #tpu.memory_space<vmem>>, vector<8x1024xf32>,
    return
  }
  func.func @transform_0(%arg0: i32) -> (i32, i32) {
    %c0_i32 = arith.constant 0 : i32
    %c0_i32_0 = arith.constant 0 : i32
    %c0_i32_1 = arith.constant 0 : i32
    return %c0_i32, %c0_i32_0 : i32, i32
  }
  func.func @transform_1(%arg0: i32) -> (i32, i32) {
    %c0_i32 = arith.constant 0 : i32
    %c0_i32_0 = arith.constant 0 : i32
    return %c0_i32, %arg0 : i32, i32
  }
  func.func @transform_2(%arg0: i32) -> (i32, i32) {
    %c0_i32 = arith.constant 0 : i32
    %c0_i32_0 = arith.constant 0 : i32
    return %c0_i32, %arg0 : i32, i32
  }
  func.func @transform_3(%arg0: i32) -> (i32, i32) {
    %c0_i32 = arith.constant 0 : i32
    %c0_i32_0 = arith.constant 0 : i32
    return %c0_i32, %arg0 : i32, i32
  }
}

module attributes {stable_mosaic.version = 11 : i64} {
  func.func @gru_attn_concat_kernel(%arg0: memref<8x128xf32, #tpu.memory_space<vmem>>, %arg1: memref<8x128xf32, #tpu.memory_space<vmem>>, %arg2: memref<8x8x128xf32, #tpu.memory_space<vmem>>, %arg3: memref<128x128xbf16, #tpu.memory_space<vmem>>, %arg4: memref<128x128xbf16, #tpu.memory_space<vmem>>, %arg5: memref<128x128xbf16, #tpu.memory_space<vmem>>, %arg6: memref<128x128xbf16, #tpu.memory_space<vmem>>, %arg7: memref<128x128xbf16, #tpu.memory_space<vmem>>, %arg8: memref<128x128xbf16, #tpu.memory_space<vmem>>, %arg9: memref<1x128xf32, #tpu.memory_space<vmem>>, %arg10: memref<1x128xf32, #tpu.memory_space<vmem>>, %arg11: memref<1x128xf32, #tpu.memory_space<vmem>>, %arg12: memref<1x128xf32, #tpu.memory_space<vmem>>, %arg13: memref<128x128xbf16, #tpu.memory_space<vmem>>, %arg14: memref<1x128xf32, #tpu.memory_space<vmem>>, %arg15: memref<128x128xbf16, #tpu.memory_space<vmem>>, %arg16: memref<128x128xbf16, #tpu.memory_space<vmem>>, %arg17: memref<1x128xf32, #tpu.memory_space<vmem>>, %arg18: memref<8x128xf32, #tpu.memory_space<vmem>>, %arg19: memref<8x8xf32, #tpu.memory_space<vmem>>, %arg20: memref<8x128xbf16, #tpu.memory_space<vmem>>) attributes {dimension_semantics = [], scalar_prefetch = 0 : i64, scratch_operands = 0 : i64, tpu.core_type = #tpu.core_type<tc>} {
    %c0 = arith.constant 0 : index
    %c0_0 = arith.constant 0 : index
    %0 = vector.load %arg0[%c0, %c0_0] : memref<8x128xf32, #tpu.memory_space<vmem>>, vector<8x128xf32>
    %c0_1 = arith.constant 0 : index
    %c0_2 = arith.constant 0 : index
    %1 = vector.load %arg1[%c0_1, %c0_2] : memref<8x128xf32, #tpu.memory_space<vmem>>, vector<8x128xf32>
    %2 = arith.truncf %0 : vector<8x128xf32> to vector<8x128xbf16>
    %3 = arith.truncf %1 : vector<8x128xf32> to vector<8x128xbf16>
    %c0_3 = arith.constant 0 : index
    %c0_4 = arith.constant 0 : index
    %4 = vector.load %arg3[%c0_3, %c0_4] : memref<128x128xbf16, #tpu.memory_space<vmem>>, vector<128x128xbf16>
    %cst = arith.constant dense<0.000000e+00> : vector<8x128xf32>
    %5 = tpu.matmul %2, %4, %cst {dimension_numbers = #tpu.dot_dimension_numbers<[1], [0], [0], [1], [0, 0, 1, 1], [], []>} : vector<8x128xbf16>, vector<128x128xbf16>, vector<8x128xf32> -> vector<8x128xf32>
    %c0_5 = arith.constant 0 : index
    %c0_6 = arith.constant 0 : index
    %6 = vector.load %arg6[%c0_5, %c0_6] : memref<128x128xbf16, #tpu.memory_space<vmem>>, vector<128x128xbf16>
    %cst_7 = arith.constant dense<0.000000e+00> : vector<8x128xf32>
    %7 = tpu.matmul %3, %6, %cst_7 {dimension_numbers = #tpu.dot_dimension_numbers<[1], [0], [0], [1], [0, 0, 1, 1], [], []>} : vector<8x128xbf16>, vector<128x128xbf16>, vector<8x128xf32> -> vector<8x128xf32>
    %8 = arith.addf %5, %7 : vector<8x128xf32>
    %c0_8 = arith.constant 0 : index
    %c0_9 = arith.constant 0 : index
    %9 = vector.load %arg9[%c0_8, %c0_9] : memref<1x128xf32, #tpu.memory_space<vmem>>, vector<1x128xf32>
    %10 = vector.broadcast %9 : vector<1x128xf32> to vector<8x128xf32>
    %11 = arith.addf %8, %10 : vector<8x128xf32>
    %12 = arith.negf %11 : vector<8x128xf32>
    %13 = math.exp %12 : vector<8x128xf32>
    %cst_10 = arith.constant 1.000000e+00 : f32
    %14 = vector.broadcast %cst_10 : f32 to vector<8x128xf32>
    %15 = arith.addf %14, %13 : vector<8x128xf32>
    %16 = arith.divf %14, %15 : vector<8x128xf32>
    %c0_11 = arith.constant 0 : index
    %c0_12 = arith.constant 0 : index
    %17 = vector.load %arg4[%c0_11, %c0_12] : memref<128x128xbf16, #tpu.memory_space<vmem>>, vector<128x128xbf16>
    %cst_13 = arith.constant dense<0.000000e+00> : vector<8x128xf32>
    %18 = tpu.matmul %2, %17, %cst_13 {dimension_numbers = #tpu.dot_dimension_numbers<[1], [0], [0], [1], [0, 0, 1, 1], [], []>} : vector<8x128xbf16>, vector<128x128xbf16>, vector<8x128xf32> -> vector<8x128xf32>
    %c0_14 = arith.constant 0 : index
    %c0_15 = arith.constant 0 : index
    %19 = vector.load %arg7[%c0_14, %c0_15] : memref<128x128xbf16, #tpu.memory_space<vmem>>, vector<128x128xbf16>
    %cst_16 = arith.constant dense<0.000000e+00> : vector<8x128xf32>
    %20 = tpu.matmul %3, %19, %cst_16 {dimension_numbers = #tpu.dot_dimension_numbers<[1], [0], [0], [1], [0, 0, 1, 1], [], []>} : vector<8x128xbf16>, vector<128x128xbf16>, vector<8x128xf32> -> vector<8x128xf32>
    %21 = arith.addf %18, %20 : vector<8x128xf32>
    %c0_17 = arith.constant 0 : index
    %c0_18 = arith.constant 0 : index
    %22 = vector.load %arg10[%c0_17, %c0_18] : memref<1x128xf32, #tpu.memory_space<vmem>>, vector<1x128xf32>
    %23 = vector.broadcast %22 : vector<1x128xf32> to vector<8x128xf32>
    %24 = arith.addf %21, %23 : vector<8x128xf32>
    %25 = arith.negf %24 : vector<8x128xf32>
    %26 = math.exp %25 : vector<8x128xf32>
    %cst_19 = arith.constant 1.000000e+00 : f32
    %27 = vector.broadcast %cst_19 : f32 to vector<8x128xf32>
    %28 = arith.addf %27, %26 : vector<8x128xf32>
    %29 = arith.divf %27, %28 : vector<8x128xf32>
    %c0_20 = arith.constant 0 : index
    %c0_21 = arith.constant 0 : index
    %30 = vector.load %arg5[%c0_20, %c0_21] : memref<128x128xbf16, #tpu.memory_space<vmem>>, vector<128x128xbf16>
    %cst_22 = arith.constant dense<0.000000e+00> : vector<8x128xf32>
    %31 = tpu.matmul %2, %30, %cst_22 {dimension_numbers = #tpu.dot_dimension_numbers<[1], [0], [0], [1], [0, 0, 1, 1], [], []>} : vector<8x128xbf16>, vector<128x128xbf16>, vector<8x128xf32> -> vector<8x128xf32>
    %c0_23 = arith.constant 0 : index
    %c0_24 = arith.constant 0 : index
    %32 = vector.load %arg11[%c0_23, %c0_24] : memref<1x128xf32, #tpu.memory_space<vmem>>, vector<1x128xf32>
    %33 = vector.broadcast %32 : vector<1x128xf32> to vector<8x128xf32>
    %34 = arith.addf %31, %33 : vector<8x128xf32>
    %c0_25 = arith.constant 0 : index
    %c0_26 = arith.constant 0 : index
    %35 = vector.load %arg8[%c0_25, %c0_26] : memref<128x128xbf16, #tpu.memory_space<vmem>>, vector<128x128xbf16>
    %cst_27 = arith.constant dense<0.000000e+00> : vector<8x128xf32>
    %36 = tpu.matmul %3, %35, %cst_27 {dimension_numbers = #tpu.dot_dimension_numbers<[1], [0], [0], [1], [0, 0, 1, 1], [], []>} : vector<8x128xbf16>, vector<128x128xbf16>, vector<8x128xf32> -> vector<8x128xf32>
    %c0_28 = arith.constant 0 : index
    %c0_29 = arith.constant 0 : index
    %37 = vector.load %arg12[%c0_28, %c0_29] : memref<1x128xf32, #tpu.memory_space<vmem>>, vector<1x128xf32>
    %38 = vector.broadcast %37 : vector<1x128xf32> to vector<8x128xf32>
    %39 = arith.addf %36, %38 : vector<8x128xf32>
    %40 = arith.mulf %16, %39 : vector<8x128xf32>
    %41 = arith.addf %34, %40 : vector<8x128xf32>
    %42 = math.tanh %41 : vector<8x128xf32>
    %cst_30 = arith.constant 1.000000e+00 : f32
    %43 = vector.broadcast %cst_30 : f32 to vector<8x128xf32>
    %44 = arith.subf %43, %29 : vector<8x128xf32>
    %45 = arith.mulf %44, %42 : vector<8x128xf32>
    %46 = arith.mulf %29, %1 : vector<8x128xf32>
    %47 = arith.addf %45, %46 : vector<8x128xf32>
    %c0_31 = arith.constant 0 : index
    %c0_32 = arith.constant 0 : index
    %48 = vector.load %arg18[%c0_31, %c0_32] : memref<8x128xf32, #tpu.memory_space<vmem>>, vector<8x128xf32>
    tpu.vector_store %arg18[%c0_31, %c0_32], %47 {strides = array<i32>} : memref<8x128xf32, #tpu.memory_space<vmem>>, vector<8x128xf32>,
    %c0_33 = arith.constant 0 : index
    %c0_34 = arith.constant 0 : index
    %c0_35 = arith.constant 0 : index
    %49 = vector.load %arg2[%c0_33, %c0_34, %c0_35] : memref<8x8x128xf32, #tpu.memory_space<vmem>>, vector<8x8x128xf32>
    %50 = arith.truncf %47 : vector<8x128xf32> to vector<8x128xbf16>
    %c0_36 = arith.constant 0 : index
    %c0_37 = arith.constant 0 : index
    %51 = vector.load %arg13[%c0_36, %c0_37] : memref<128x128xbf16, #tpu.memory_space<vmem>>, vector<128x128xbf16>
    %cst_38 = arith.constant dense<0.000000e+00> : vector<8x128xf32>
    %52 = tpu.matmul %50, %51, %cst_38 {dimension_numbers = #tpu.dot_dimension_numbers<[1], [0], [0], [1], [0, 0, 1, 1], [], []>} : vector<8x128xbf16>, vector<128x128xbf16>, vector<8x128xf32> -> vector<8x128xf32>
    %53 = vector.shape_cast %52 : vector<8x128xf32> to vector<8x1x128xf32>
    %54 = vector.broadcast %53 : vector<8x1x128xf32> to vector<8x8x128xf32>
    %55 = arith.mulf %54, %49 : vector<8x8x128xf32>
    %cst_39 = arith.constant dense<0.000000e+00> : vector<8x8xf32>
    %56 = vector.multi_reduction <add>, %55, %cst_39 [2] : vector<8x8x128xf32> to vector<8x8xf32>
    %c0_40 = arith.constant 0 : index
    %c0_41 = arith.constant 0 : index
    %57 = vector.load %arg14[%c0_40, %c0_41] : memref<1x128xf32, #tpu.memory_space<vmem>>, vector<1x128xf32>
    %58 = vector.broadcast %57 : vector<1x128xf32> to vector<8x128xf32>
    %59 = arith.mulf %47, %58 : vector<8x128xf32>
    %cst_42 = arith.constant dense<0.000000e+00> : vector<8xf32>
    %60 = vector.multi_reduction <add>, %59, %cst_42 [1] : vector<8x128xf32> to vector<8xf32>
    %61 = vector.shape_cast %60 : vector<8xf32> to vector<8x1xf32>
    %62 = vector.broadcast %61 : vector<8x1xf32> to vector<8x8xf32>
    %63 = arith.addf %56, %62 : vector<8x8xf32>
    %cst_43 = arith.constant dense<0xFF800000> : vector<8xf32>
    %64 = vector.multi_reduction <maximumf>, %63, %cst_43 [1] : vector<8x8xf32> to vector<8xf32>
    %65 = vector.shape_cast %64 : vector<8xf32> to vector<8x1xf32>
    %66 = vector.broadcast %65 : vector<8x1xf32> to vector<8x8xf32>
    %67 = arith.subf %63, %66 : vector<8x8xf32>
    %68 = math.exp %67 : vector<8x8xf32>
    %cst_44 = arith.constant dense<0.000000e+00> : vector<8xf32>
    %69 = vector.multi_reduction <add>, %68, %cst_44 [1] : vector<8x8xf32> to vector<8xf32>
    %70 = vector.shape_cast %69 : vector<8xf32> to vector<8x1xf32>
    %71 = vector.broadcast %70 : vector<8x1xf32> to vector<8x8xf32>
    %72 = arith.divf %68, %71 : vector<8x8xf32>
    %c0_45 = arith.constant 0 : index
    %c0_46 = arith.constant 0 : index
    %73 = vector.load %arg19[%c0_45, %c0_46] : memref<8x8xf32, #tpu.memory_space<vmem>>, vector<8x8xf32>
    tpu.vector_store %arg19[%c0_45, %c0_46], %72 {strides = array<i32>} : memref<8x8xf32, #tpu.memory_space<vmem>>, vector<8x8xf32>,
    %74 = vector.shape_cast %72 : vector<8x8xf32> to vector<8x1x8xf32>
    "tpu.trace_start"() <{level = 10 : i32, message = "bql,blh->bqh"}> : () -> ()
    %cst_47 = arith.constant dense<0.000000e+00> : vector<8x1x128xf32>
    %75 = tpu.matmul %74, %49, %cst_47 {dimension_numbers = #tpu.dot_dimension_numbers<[2], [1], [1], [2], [0, 0, 0, 1, 1, 2], [0], [0]>} : vector<8x1x8xf32>, vector<8x8x128xf32>, vector<8x1x128xf32> -> vector<8x1x128xf32>
    "tpu.trace_stop"() : () -> ()
    %76 = vector.shape_cast %75 : vector<8x1x128xf32> to vector<8x128xf32>
    %77 = arith.truncf %47 : vector<8x128xf32> to vector<8x128xbf16>
    %c0_48 = arith.constant 0 : index
    %c0_49 = arith.constant 0 : index
    %78 = vector.load %arg15[%c0_48, %c0_49] : memref<128x128xbf16, #tpu.memory_space<vmem>>, vector<128x128xbf16>
    %cst_50 = arith.constant dense<0.000000e+00> : vector<8x128xf32>
    %79 = tpu.matmul %77, %78, %cst_50 {dimension_numbers = #tpu.dot_dimension_numbers<[1], [0], [0], [1], [0, 0, 1, 1], [], []>} : vector<8x128xbf16>, vector<128x128xbf16>, vector<8x128xf32> -> vector<8x128xf32>
    %80 = arith.truncf %76 : vector<8x128xf32> to vector<8x128xbf16>
    %c0_51 = arith.constant 0 : index
    %c0_52 = arith.constant 0 : index
    %81 = vector.load %arg16[%c0_51, %c0_52] : memref<128x128xbf16, #tpu.memory_space<vmem>>, vector<128x128xbf16>
    %cst_53 = arith.constant dense<0.000000e+00> : vector<8x128xf32>
    %82 = tpu.matmul %80, %81, %cst_53 {dimension_numbers = #tpu.dot_dimension_numbers<[1], [0], [0], [1], [0, 0, 1, 1], [], []>} : vector<8x128xbf16>, vector<128x128xbf16>, vector<8x128xf32> -> vector<8x128xf32>
    %83 = arith.addf %79, %82 : vector<8x128xf32>
    %c0_54 = arith.constant 0 : index
    %c0_55 = arith.constant 0 : index
    %84 = vector.load %arg17[%c0_54, %c0_55] : memref<1x128xf32, #tpu.memory_space<vmem>>, vector<1x128xf32>
    %85 = vector.broadcast %84 : vector<1x128xf32> to vector<8x128xf32>
    %86 = arith.addf %83, %85 : vector<8x128xf32>
    %87 = math.tanh %86 : vector<8x128xf32>
    %88 = arith.truncf %87 : vector<8x128xf32> to vector<8x128xbf16>
    %c0_56 = arith.constant 0 : index
    %c0_57 = arith.constant 0 : index
    %89 = vector.load %arg20[%c0_56, %c0_57] : memref<8x128xbf16, #tpu.memory_space<vmem>>, vector<8x128xbf16>
    tpu.vector_store %arg20[%c0_56, %c0_57], %88 {strides = array<i32>} : memref<8x128xbf16, #tpu.memory_space<vmem>>, vector<8x128xbf16>,
    return
  }
}

</mosaic_0001>

<bundles_post_ra>
// kernel: _lambda_.3
= control target key start
LH: loop header
LB: loop body
LE: loop exit
PB: predicated region body
PF: predicated region fallthrough
CT: control target
= control target key end

     0   :  { %s1297_s1 = inlined_call_operand.vmem [shape: bf16[128,1024], index: 1, kind: input, shape index: {}]   ;;  %s1298_s0 = inlined_call_operand.vmem [shape: bf16[8,128], index: 0, kind: input, shape index: {}]   ;;  %s1299_s2 = inlined_call_operand.vmem [shape: f32[1,1024], index: 2, kind: input, shape index: {}]   ;;  %s1300_s3 = inlined_call_operand.vmem [shape: f32[8,1024], index: 3, kind: output, shape index: {}]  }
   0x1   :  { %v759_v0 = vld [vmem:[%s1297_s1 + $0x1c0] sm:$0xf]  ;;  %v845_v2 = vld [vmem:[%s1297_s1 + $0x1c4] sm:$0xf]  ;;  %v767_v5 = vld [vmem:[%s1297_s1 + $0x1c8] sm:$0xf] }
   0x2   :  { %v849_v1 = vld [vmem:[%s1297_s1 + $0x1dc] sm:$0xf0]  ;;  %v761_v4 = vld [vmem:[%s1297_s1 + $0x1e0] sm:$0xf0]  ;;  %v850_v6 = vld [vmem:[%s1297_s1 + $0x1e4] sm:$0xf0] }
   0x3   :  { %v760_v3 = vor.u32 %v849_v1, %v759_v0  ;;  %v764_v7 = vor.u32 %v845_v2, %v761_v4  ;;  %v768_v8 = vor.u32 %v850_v6, %v767_v5  ;;  %v846_v9 = vld [vmem:[%s1297_s1 + $0x1cc] sm:$0xf]  ;;  %v727_v11 = vld [vmem:[%s1297_s1 + $0x180] sm:$0xf]  ;;  %v837_v14 = vld [vmem:[%s1297_s1 + $0x184] sm:$0xf] }
   0x4   :  { %v769_v10 = vld [vmem:[%s1297_s1 + $0x1e8] sm:$0xf0]  ;;  %v841_v13 = vld [vmem:[%s1297_s1 + $0x19c] sm:$0xf0]  ;;  %v729_v15 = vld [vmem:[%s1297_s1 + $0x1a0] sm:$0xf0] }
   0x5   :  { %417 = vmatpush.bf16.msra.mxu0 %v760_v3  ;;  %v772_v12 = vor.u32 %v846_v9, %v769_v10  ;;  %430 = vmatpush.bf16.msra.mxu1 %v764_v7  ;;  %v728_v16 = vor.u32 %v841_v13, %v727_v11  ;;  %v732_v17 = vor.u32 %v837_v14, %v729_v15  ;;  %v735_v18 = vld [vmem:[%s1297_s1 + $0x188] sm:$0xf]  ;;  %v838_v20 = vld [vmem:[%s1297_s1 + $0x18c] sm:$0xf]  ;;  %v695_v23 = vld [vmem:[%s1297_s1 + $0x140] sm:$0xf] }
   0x6   :  { %443 = vmatpush.bf16.msra.mxu2 %v768_v8  ;;  %v842_v19 = vld [vmem:[%s1297_s1 + $0x1a4] sm:$0xf0]  ;;  %v737_v22 = vld [vmem:[%s1297_s1 + $0x1a8] sm:$0xf0]  ;;  %v833_v24 = vld [vmem:[%s1297_s1 + $0x15c] sm:$0xf0] }
   0x7   :  { %456 = vmatpush.bf16.msra.mxu3 %v772_v12  ;;  %v736_v21 = vor.u32 %v842_v19, %v735_v18  ;;  %v740_v25 = vor.u32 %v838_v20, %v737_v22  ;;  %v829_v26 = vld [vmem:[%s1297_s1 + $0x144] sm:$0xf]  ;;  %v703_v28 = vld [vmem:[%s1297_s1 + $0x148] sm:$0xf]  ;;  %v696_v29 = vor.u32 %v833_v24, %v695_v23  ;;  %v830_v31 = vld [vmem:[%s1297_s1 + $0x14c] sm:$0xf] }
   0x8   :  { %v697_v27 = vld [vmem:[%s1297_s1 + $0x160] sm:$0xf0]  ;;  %v834_v30 = vld [vmem:[%s1297_s1 + $0x164] sm:$0xf0]  ;;  %v705_v32 = vld [vmem:[%s1297_s1 + $0x168] sm:$0xf0] }
   0x9   :  { %418 = vmatpush.bf16.msra.mxu0 %v728_v16  ;;  %431 = vmatpush.bf16.msra.mxu1 %v732_v17  ;;  %v700_v33 = vor.u32 %v829_v26, %v697_v27  ;;  %v704_v34 = vor.u32 %v834_v30, %v703_v28  ;;  %v663_v35 = vld [vmem:[%s1297_s1 + $0x100] sm:$0xf]  ;;  %v821_v37 = vld [vmem:[%s1297_s1 + $0x104] sm:$0xf]  ;;  %v708_v38 = vor.u32 %v830_v31, %v705_v32  ;;  %v671_v40 = vld [vmem:[%s1297_s1 + $0x108] sm:$0xf] }
   0xa   :  { %444 = vmatpush.bf16.msra.mxu2 %v736_v21  ;;  %v825_v36 = vld [vmem:[%s1297_s1 + $0x11c] sm:$0xf0]  ;;  %v665_v39 = vld [vmem:[%s1297_s1 + $0x120] sm:$0xf0]  ;;  %v826_v41 = vld [vmem:[%s1297_s1 + $0x124] sm:$0xf0] }
   0xb   :  { %457 = vmatpush.bf16.msra.mxu3 %v740_v25  ;;  %v822_v42 = vld [vmem:[%s1297_s1 + $0x10c] sm:$0xf]  ;;  %v664_v44 = vor.u32 %v825_v36, %v663_v35  ;;  %v668_v45 = vor.u32 %v821_v37, %v665_v39  ;;  %v672_v46 = vor.u32 %v826_v41, %v671_v40  ;;  %v631_v47 = vld [vmem:[%s1297_s1 + $0xc0] sm:$0xf]  ;;  %v813_v49 = vld [vmem:[%s1297_s1 + $0xc4] sm:$0xf] }
   0xc   :  { %v673_v43 = vld [vmem:[%s1297_s1 + $0x128] sm:$0xf0]  ;;  %v817_v48 = vld [vmem:[%s1297_s1 + $0xdc] sm:$0xf0]  ;;  %v633_v51 = vld [vmem:[%s1297_s1 + $0xe0] sm:$0xf0] }
   0xd   :  { %419 = vmatpush.bf16.msra.mxu0 %v696_v29  ;;  %432 = vmatpush.bf16.msra.mxu1 %v700_v33  ;;  %v676_v50 = vor.u32 %v822_v42, %v673_v43  ;;  %v639_v52 = vld [vmem:[%s1297_s1 + $0xc8] sm:$0xf]  ;;  %v814_v54 = vld [vmem:[%s1297_s1 + $0xcc] sm:$0xf]  ;;  %v632_v56 = vor.u32 %v817_v48, %v631_v47  ;;  %v636_v57 = vor.u32 %v813_v49, %v633_v51  ;;  %v599_v59 = vld [vmem:[%s1297_s1 + $0x80] sm:$0xf] }
   0xe   :  { %445 = vmatpush.bf16.msra.mxu2 %v704_v34  ;;  %v818_v53 = vld [vmem:[%s1297_s1 + $0xe4] sm:$0xf0]  ;;  %v641_v55 = vld [vmem:[%s1297_s1 + $0xe8] sm:$0xf0]  ;;  %v809_v60 = vld [vmem:[%s1297_s1 + $0x9c] sm:$0xf0] }
   0xf   :  { %458 = vmatpush.bf16.msra.mxu3 %v708_v38  ;;  %v640_v58 = vor.u32 %v818_v53, %v639_v52  ;;  %v805_v61 = vld [vmem:[%s1297_s1 + $0x84] sm:$0xf]  ;;  %v644_v62 = vor.u32 %v814_v54, %v641_v55  ;;  %v607_v0 = vld [vmem:[%s1297_s1 + $0x88] sm:$0xf]  ;;  %v806_v2 = vld [vmem:[%s1297_s1 + $0x8c] sm:$0xf]  ;;  %v600_v4 = vor.u32 %v809_v60, %v599_v59 }
  0x10   :  { %v601_v63 = vld [vmem:[%s1297_s1 + $0xa0] sm:$0xf0]  ;;  %v810_v1 = vld [vmem:[%s1297_s1 + $0xa4] sm:$0xf0]  ;;  %v609_v3 = vld [vmem:[%s1297_s1 + $0xa8] sm:$0xf0] }
  0x11   :  { %420 = vmatpush.bf16.msra.mxu0 %v664_v44  ;;  %433 = vmatpush.bf16.msra.mxu1 %v668_v45  ;;  %v604_v5 = vor.u32 %v805_v61, %v601_v63  ;;  %v608_v6 = vor.u32 %v810_v1, %v607_v0  ;;  %v567_v7 = vld [vmem:[%s1297_s1 + $0x40] sm:$0xf]  ;;  %v797_v9 = vld [vmem:[%s1297_s1 + $0x44] sm:$0xf]  ;;  %v612_v10 = vor.u32 %v806_v2, %v609_v3  ;;  %v575_v12 = vld [vmem:[%s1297_s1 + $0x48] sm:$0xf] }
  0x12   :  { %446 = vmatpush.bf16.msra.mxu2 %v672_v46  ;;  %v801_v8 = vld [vmem:[%s1297_s1 + $0x5c] sm:$0xf0]  ;;  %v569_v11 = vld [vmem:[%s1297_s1 + $0x60] sm:$0xf0]  ;;  %v802_v13 = vld [vmem:[%s1297_s1 + $0x64] sm:$0xf0] }
  0x13   :  { %459 = vmatpush.bf16.msra.mxu3 %v676_v50  ;;  %v798_v14 = vld [vmem:[%s1297_s1 + $0x4c] sm:$0xf]  ;;  %v568_v16 = vor.u32 %v801_v8, %v567_v7  ;;  %v535_v17 = vld [vmem:[%s1297_s1] sm:$0xf]  ;;  %v572_v19 = vor.u32 %v797_v9, %v569_v11  ;;  %v576_v20 = vor.u32 %v802_v13, %v575_v12  ;;  %v789_v21 = vld [vmem:[%s1297_s1 + $0x4] sm:$0xf] }
  0x14   :  { %v577_v15 = vld [vmem:[%s1297_s1 + $0x68] sm:$0xf0]  ;;  %v793_v18 = vld [vmem:[%s1297_s1 + $0x1c] sm:$0xf0]  ;;  %v537_v22 = vld [vmem:[%s1297_s1 + $0x20] sm:$0xf0] }
  0x15   :  { %421 = vmatpush.bf16.msra.mxu0 %v632_v56  ;;  %434 = vmatpush.bf16.msra.mxu1 %v636_v57  ;;  %v543_v23 = vld [vmem:[%s1297_s1 + $0x8] sm:$0xf]  ;;  %v580_v24 = vor.u32 %v798_v14, %v577_v15  ;;  %v790_v26 = vld [vmem:[%s1297_s1 + $0xc] sm:$0xf]  ;;  %v775_v28 = vld [vmem:[%s1297_s1 + $0x1d0] sm:$0xf]  ;;  %v536_v31 = vor.u32 %v793_v18, %v535_v17  ;;  %v540_v35 = vor.u32 %v789_v21, %v537_v22 }
  0x16   :  { %447 = vmatpush.bf16.msra.mxu2 %v640_v58  ;;  %v794_v25 = vld [vmem:[%s1297_s1 + $0x24] sm:$0xf0]  ;;  %v545_v27 = vld [vmem:[%s1297_s1 + $0x28] sm:$0xf0]  ;;  %v851_v29 = vld [vmem:[%s1297_s1 + $0x1ec] sm:$0xf0] }
  0x17   :  { %460 = vmatpush.bf16.msra.mxu3 %v644_v62  ;;  %v847_v30 = vld [vmem:[%s1297_s1 + $0x1d4] sm:$0xf]  ;;  %v783_v33 = vld [vmem:[%s1297_s1 + $0x1d8] sm:$0xf]  ;;  %v544_v36 = vor.u32 %v794_v25, %v543_v23  ;;  %v848_v37 = vld [vmem:[%s1297_s1 + $0x1dc] sm:$0xf]  ;;  %v548_v39 = vor.u32 %v790_v26, %v545_v27  ;;  %v776_v40 = vor.u32 %v851_v29, %v775_v28 }
  0x18   :  { %v777_v32 = vld [vmem:[%s1297_s1 + $0x1f0] sm:$0xf0]  ;;  %v852_v34 = vld [vmem:[%s1297_s1 + $0x1f4] sm:$0xf0]  ;;  %v785_v38 = vld [vmem:[%s1297_s1 + $0x1f8] sm:$0xf0] }
  0x19   :  { %422 = vmatpush.bf16.msra.mxu0 %v600_v4  ;;  %435 = vmatpush.bf16.msra.mxu1 %v604_v5  ;;  %v780_v41 = vor.u32 %v847_v30, %v777_v32  ;;  %v784_v42 = vor.u32 %v852_v34, %v783_v33  ;;  %v743_v43 = vld [vmem:[%s1297_s1 + $0x190] sm:$0xf]  ;;  %v839_v45 = vld [vmem:[%s1297_s1 + $0x194] sm:$0xf]  ;;  %v788_v46 = vor.u32 %v848_v37, %v785_v38  ;;  %v751_v48 = vld [vmem:[%s1297_s1 + $0x198] sm:$0xf] }
  0x1a   :  { %448 = vmatpush.bf16.msra.mxu2 %v608_v6  ;;  %v843_v44 = vld [vmem:[%s1297_s1 + $0x1ac] sm:$0xf0]  ;;  %v745_v47 = vld [vmem:[%s1297_s1 + $0x1b0] sm:$0xf0]  ;;  %v844_v49 = vld [vmem:[%s1297_s1 + $0x1b4] sm:$0xf0] }
  0x1b   :  { %461 = vmatpush.bf16.msra.mxu3 %v612_v10  ;;  %v840_v50 = vld [vmem:[%s1297_s1 + $0x19c] sm:$0xf]  ;;  %v1116_v52 = vld [vmem:[%s1298_s0] sm:$0xf]  ;;  %v744_v53 = vor.u32 %v843_v44, %v743_v43  ;;  %v748_v54 = vor.u32 %v839_v45, %v745_v47  ;;  %v752_v55 = vor.u32 %v844_v49, %v751_v48  ;;  %v711_v56 = vld [vmem:[%s1297_s1 + $0x150] sm:$0xf] }
  0x1c   :  { %v753_v51 = vld [vmem:[%s1297_s1 + $0x1b8] sm:$0xf0]  ;;  %v835_v57 = vld [vmem:[%s1297_s1 + $0x16c] sm:$0xf0]  ;;  %v831_v58 = vld [vmem:[%s1297_s1 + $0x154] sm:$0xf] }
  0x1d   :  { %423 = vmatpush.bf16.msra.mxu0 %v568_v16  ;;  %436 = vmatpush.bf16.msra.mxu1 %v572_v19  ;;  %v756_v59 = vor.u32 %v840_v50, %v753_v51  ;;  %v713_v60 = vld [vmem:[%s1297_s1 + $0x170] sm:$0xf0]  ;;  %v719_v61 = vld [vmem:[%s1297_s1 + $0x158] sm:$0xf]  ;;  %v832_v63 = vld [vmem:[%s1297_s1 + $0x15c] sm:$0xf]  ;;  %v712_v1 = vor.u32 %v835_v57, %v711_v56 }
  0x1e   :  { %449 = vmatpush.bf16.msra.mxu2 %v576_v20  ;;  %v836_v62 = vld [vmem:[%s1297_s1 + $0x174] sm:$0xf0]  ;;  %v721_v0 = vld [vmem:[%s1297_s1 + $0x178] sm:$0xf0]  ;;  %v716_v2 = vor.u32 %v831_v58, %v713_v60  ;;  %v679_v4 = vld [vmem:[%s1297_s1 + $0x110] sm:$0xf] }
  0x1f   :  { %462 = vmatpush.bf16.msra.mxu3 %v580_v24  ;;  %v720_v3 = vor.u32 %v836_v62, %v719_v61  ;;  %v827_v5 = vld [vmem:[%s1297_s1 + $0x12c] sm:$0xf0]  ;;  %v823_v6 = vld [vmem:[%s1297_s1 + $0x114] sm:$0xf]  ;;  %v724_v7 = vor.u32 %v832_v63, %v721_v0  ;;  %v687_v9 = vld [vmem:[%s1297_s1 + $0x118] sm:$0xf] }
  0x20   :  { %v681_v8 = vld [vmem:[%s1297_s1 + $0x130] sm:$0xf0]  ;;  %v828_v10 = vld [vmem:[%s1297_s1 + $0x134] sm:$0xf0]  ;;  %v824_v11 = vld [vmem:[%s1297_s1 + $0x11c] sm:$0xf]  ;;  %v680_v13 = vor.u32 %v827_v5, %v679_v4 }
  0x21   :  { %424 = vmatpush.bf16.msra.mxu0 %v536_v31  ;;  %437 = vmatpush.bf16.msra.mxu1 %v540_v35  ;;  %v689_v12 = vld [vmem:[%s1297_s1 + $0x138] sm:$0xf0]  ;;  %v684_v14 = vor.u32 %v823_v6, %v681_v8  ;;  %v688_v15 = vor.u32 %v828_v10, %v687_v9  ;;  %v647_v16 = vld [vmem:[%s1297_s1 + $0xd0] sm:$0xf]  ;;  %v815_v18 = vld [vmem:[%s1297_s1 + $0xd4] sm:$0xf] }
  0x22   :  { %450 = vmatpush.bf16.msra.mxu2 %v544_v36  ;;  %v819_v17 = vld [vmem:[%s1297_s1 + $0xec] sm:$0xf0]  ;;  %v692_v19 = vor.u32 %v824_v11, %v689_v12  ;;  %v649_v20 = vld [vmem:[%s1297_s1 + $0xf0] sm:$0xf0]  ;;  %v655_v21 = vld [vmem:[%s1297_s1 + $0xd8] sm:$0xf] }
  0x23   :  { %463 = vmatpush.bf16.msra.mxu3 %v548_v39  ;;  %v820_v22 = vld [vmem:[%s1297_s1 + $0xf4] sm:$0xf0]  ;;  %v816_v23 = vld [vmem:[%s1297_s1 + $0xdc] sm:$0xf]  ;;  %v648_v25 = vor.u32 %v819_v17, %v647_v16  ;;  %v652_v26 = vor.u32 %v815_v18, %v649_v20  ;;  %v615_v28 = vld [vmem:[%s1297_s1 + $0x90] sm:$0xf] }
  0x24   :  { %425 = vmatmul.bf16.vlgmr.msra.gmra.mxu0 %v1116_v52  ;;  %438 = vmatmul.bf16.vlgmr.msra.gmra.mxu1 %v1116_v52  ;;  %v657_v24 = vld [vmem:[%s1297_s1 + $0xf8] sm:$0xf0]  ;;  %v656_v27 = vor.u32 %v820_v22, %v655_v21  ;;  %v811_v29 = vld [vmem:[%s1297_s1 + $0xac] sm:$0xf0]  ;;  %v807_v30 = vld [vmem:[%s1297_s1 + $0x94] sm:$0xf] }
  0x25   :  { %469 = vmatpush.bf16.msrb.mxu0 %v776_v40  ;;  %482 = vmatpush.bf16.msrb.mxu1 %v780_v41  ;;  %v660_v31 = vor.u32 %v816_v23, %v657_v24  ;;  %v617_v32 = vld [vmem:[%s1297_s1 + $0xb0] sm:$0xf0]  ;;  %v623_v33 = vld [vmem:[%s1297_s1 + $0x98] sm:$0xf]  ;;  %v808_v35 = vld [vmem:[%s1297_s1 + $0x9c] sm:$0xf]  ;;  %v616_v37 = vor.u32 %v811_v29, %v615_v28 }
  0x26   :  { %495 = vmatpush.bf16.msrb.mxu2 %v784_v42  ;;  %464 = vmatmul.bf16.vlgmr.msra.gmra.mxu3 %v1116_v52  ;;  %v812_v34 = vld [vmem:[%s1297_s1 + $0xb4] sm:$0xf0]  ;;  %v625_v36 = vld [vmem:[%s1297_s1 + $0xb8] sm:$0xf0]  ;;  %v620_v38 = vor.u32 %v807_v30, %v617_v32  ;;  %v583_v40 = vld [vmem:[%s1297_s1 + $0x50] sm:$0xf] }
  0x27   :  { %508 = vmatpush.bf16.msrb.mxu3 %v788_v46  ;;  %451 = vmatmul.bf16.vlgmr.msra.gmra.mxu2 %v1116_v52  ;;  %v624_v39 = vor.u32 %v812_v34, %v623_v33  ;;  %v803_v41 = vld [vmem:[%s1297_s1 + $0x6c] sm:$0xf0]  ;;  %v799_v42 = vld [vmem:[%s1297_s1 + $0x54] sm:$0xf]  ;;  %v628_v43 = vor.u32 %v808_v35, %v625_v36  ;;  %v591_v45 = vld [vmem:[%s1297_s1 + $0x58] sm:$0xf] }
  0x28   :  { %v585_v44 = vld [vmem:[%s1297_s1 + $0x70] sm:$0xf0]  ;;  %v804_v46 = vld [vmem:[%s1297_s1 + $0x74] sm:$0xf0]  ;;  %v800_v47 = vld [vmem:[%s1297_s1 + $0x5c] sm:$0xf]  ;;  %v584_v49 = vor.u32 %v803_v41, %v583_v40 }
  0x29   :  { %470 = vmatpush.bf16.msrb.mxu0 %v744_v53  ;;  %483 = vmatpush.bf16.msrb.mxu1 %v748_v54  ;;  %v593_v48 = vld [vmem:[%s1297_s1 + $0x78] sm:$0xf0]  ;;  %v588_v50 = vor.u32 %v799_v42, %v585_v44  ;;  %v592_v51 = vor.u32 %v804_v46, %v591_v45  ;;  %v551_v53 = vld [vmem:[%s1297_s1 + $0x10] sm:$0xf]  ;;  %v553_v57 = vld [vmem:[%s1297_s1 + $0x30] sm:$0xf0] }
  0x2a   :  { %496 = vmatpush.bf16.msrb.mxu2 %v752_v55  ;;  %v795_v54 = vld [vmem:[%s1297_s1 + $0x2c] sm:$0xf0]  ;;  %v791_v55 = vld [vmem:[%s1297_s1 + $0x14] sm:$0xf]  ;;  %v596_v56 = vor.u32 %v800_v47, %v593_v48  ;;  %v559_v58 = vld [vmem:[%s1297_s1 + $0x18] sm:$0xf] }
  0x2b   :  { %509 = vmatpush.bf16.msrb.mxu3 %v756_v59  ;;  %v796_v59 = vld [vmem:[%s1297_s1 + $0x34] sm:$0xf0]  ;;  %v792_v60 = vld [vmem:[%s1297_s1 + $0x1c] sm:$0xf]  ;;  %v552_v62 = vor.u32 %v795_v54, %v551_v53  ;;  %v556_v63 = vor.u32 %v791_v55, %v553_v57 }
  0x2c   :  { %v561_v61 = vld [vmem:[%s1297_s1 + $0x38] sm:$0xf0]  ;;  %v560_v0 = vor.u32 %v796_v59, %v559_v58 }
  0x2d   :  { %471 = vmatpush.bf16.msrb.mxu0 %v712_v1  ;;  %484 = vmatpush.bf16.msrb.mxu1 %v716_v2  ;;  %v564_v1 = vor.u32 %v792_v60, %v561_v61  ;;  %v79_v2 = vld [vmem:[%s1299_s2] sm:$0xff] }
  0x2e   :  { %497 = vmatpush.bf16.msrb.mxu2 %v720_v3  ;;  %v81_v3 = vperm.slane %v79_v2, 0  ;;  %v82_v4 = vperm.slane %v79_v2, 1  ;;  %v83_v9 = vperm.slane %v79_v2, 2  ;;  %v84_v10 = vperm.slane %v79_v2, 3 }
  0x2f   :  { %510 = vmatpush.bf16.msrb.mxu3 %v724_v7  ;;  %v85_v18 = vperm.slane %v79_v2, 4  ;;  %v87_v24 = vperm.slane %v79_v2, 6 }
  0x31   :  { %472 = vmatpush.bf16.msrb.mxu0 %v680_v13  ;;  %485 = vmatpush.bf16.msrb.mxu1 %v684_v14 }
  0x32   :  { %498 = vmatpush.bf16.msrb.mxu2 %v688_v15 }
  0x33   :  { %511 = vmatpush.bf16.msrb.mxu3 %v692_v19  ;;  %v86_v19 = vperm.slane %v79_v2, 5 }
  0x35   :  { %473 = vmatpush.bf16.msrb.mxu0 %v648_v25  ;;  %486 = vmatpush.bf16.msrb.mxu1 %v652_v26  ;;  %v88_v25 = vperm.slane %v79_v2, 7 }
  0x36   :  { %499 = vmatpush.bf16.msrb.mxu2 %v656_v27 }
  0x37   :  { %512 = vmatpush.bf16.msrb.mxu3 %v660_v31 }
  0x39   :  { %474 = vmatpush.bf16.msrb.mxu0 %v616_v37  ;;  %487 = vmatpush.bf16.msrb.mxu1 %v620_v38 }
  0x3a   :  { %500 = vmatpush.bf16.msrb.mxu2 %v624_v39 }
  0x3b   :  { %513 = vmatpush.bf16.msrb.mxu3 %v628_v43 }
  0x3d   :  { %475 = vmatpush.bf16.msrb.mxu0 %v584_v49  ;;  %488 = vmatpush.bf16.msrb.mxu1 %v588_v50 }
  0x3e   :  { %501 = vmatpush.bf16.msrb.mxu2 %v592_v51 }
  0x3f   :  { %514 = vmatpush.bf16.msrb.mxu3 %v596_v56 }
  0x41   :  { %476 = vmatpush.bf16.msrb.mxu0 %v552_v62  ;;  %489 = vmatpush.bf16.msrb.mxu1 %v556_v63 }
  0x42   :  { %502 = vmatpush.bf16.msrb.mxu2 %v560_v0 }
  0x43   :  { %515 = vmatpush.bf16.msrb.mxu3 %v564_v1 }
  0x44   :  { %477 = vmatmul.bf16.vlgmr.msrb.gmra.mxu0 %v1116_v52  ;;  %490 = vmatmul.bf16.vlgmr.msrb.gmra.mxu1 %v1116_v52 }
  0x45   :  { %503 = vmatmul.bf16.vlgmr.msrb.gmra.mxu2 %v1116_v52 }
  0x46   :  { %516 = vmatmul.bf16.vlgmr.msrb.gmra.mxu3 %v1116_v52 }
  0xa1   :  { %v426_v5 = vpop.f32.mrf.mxu0  ;;  %v439_v7 = vpop.f32.mrf.mxu1 }
  0xa2   :  { %v427_v6 = vadd.f32 %v426_v5, %v81_v3  ;;  %v440_v8 = vadd.f32 %v439_v7, %v82_v4 }
  0xa4   :  { %521 = vst [vmem:[%s1300_s3] sm:$0xff] %v427_v6 }
  0xa5   :  { %522 = vst [vmem:[%s1300_s3 + $0x8] sm:$0xff] %v440_v8 }
  0xa9   :  { %v465_v12 = vpop.f32.mrf.mxu3  ;;  %v428_v14 = vpop.f32.mrf.mxu0 }
  0xaa   :  { %v452_v52 = vpop.f32.mrf.mxu2  ;;  %v466_v13 = vadd.f32 %v465_v12, %v84_v10  ;;  %v441_v15 = vpop.f32.mrf.mxu1 }
  0xab   :  { %v453_v11 = vadd.f32 %v452_v52, %v83_v9 }
  0xac   :  { %524 = vst [vmem:[%s1300_s3 + $0x18] sm:$0xff] %v466_v13 }
  0xad   :  { %523 = vst [vmem:[%s1300_s3 + $0x10] sm:$0xff] %v453_v11 }
  0xb1   :  { %v467_v17 = vpop.f32.mrf.mxu3 }
  0xb2   :  { %v454_v16 = vpop.f32.mrf.mxu2 }
  0xc1   :  { %v478_v20 = vpop.f32.mrf.mxu0  ;;  %v491_v22 = vpop.f32.mrf.mxu1 }
  0xc2   :  { %v479_v21 = vadd.f32 %v478_v20, %v85_v18  ;;  %v492_v23 = vadd.f32 %v491_v22, %v86_v19 }
  0xc4   :  { %525 = vst [vmem:[%s1300_s3 + $0x20] sm:$0xff] %v479_v21 }
  0xc5   :  { %526 = vst [vmem:[%s1300_s3 + $0x28] sm:$0xff] %v492_v23 }
  0xc8   :  { %v504_v26 = vpop.f32.mrf.mxu2 }
  0xc9   :  { %v505_v27 = vadd.f32 %v504_v26, %v87_v24  ;;  %v517_v28 = vpop.f32.mrf.mxu3  ;;  %v480_v29 = vpop.f32.mrf.mxu0 }
  0xca   :  { %v518_v30 = vadd.f32 %v517_v28, %v88_v25  ;;  %v493_v31 = vpop.f32.mrf.mxu1 }
  0xcb   :  { %527 = vst [vmem:[%s1300_s3 + $0x30] sm:$0xff] %v505_v27 }
  0xcc   :  { %528 = vst [vmem:[%s1300_s3 + $0x38] sm:$0xff] %v518_v30 }
  0xd0   :  { %v506_v32 = vpop.f32.mrf.mxu2 }
  0xd1   :  { %v519_v33 = vpop.f32.mrf.mxu3 }

// kernel: _lambda_.2
= control target key start
LH: loop header
LB: loop body
LE: loop exit
PB: predicated region body
PF: predicated region fallthrough
CT: control target
= control target key end

     0   :  { %s2705_s0 = inlined_call_operand.vmem [shape: f32[8,128], index: 0, kind: input, shape index: {}]   ;;  %s2706_s1 = inlined_call_operand.vmem [shape: f32[8,128], index: 1, kind: input, shape index: {}]   ;;  %s2707_s2 = inlined_call_operand.vmem [shape: f32[8,8,128], index: 2, kind: input, shape index: {}]   ;;  %s2708_s3 = inlined_call_operand.hbm [shape: bf16[128,128], index: 3, kind: input, shape index: {}]   ;;  %s2709_s4 = inlined_call_operand.hbm [shape: bf16[128,128], index: 4, kind: input, shape index: {}]   ;;  %s2710_s5 = inlined_call_operand.hbm [shape: bf16[128,128], index: 5, kind: input, shape index: {}]   ;;  %s2711_s6 = inlined_call_operand.hbm [shape: bf16[128,128], index: 6, kind: input, shape index: {}]   ;;  %s2712_s7 = inlined_call_operand.hbm [shape: bf16[128,128], index: 7, kind: input, shape index: {}]   ;;  %s2713_s8 = inlined_call_operand.hbm [shape: bf16[128,128], index: 8, kind: input, shape index: {}]   ;;  %s2714_s9 = inlined_call_operand.vmem [shape: f32[1,128], index: 9, kind: input, shape index: {}]   ;;  %s2715_s10 = inlined_call_operand.vmem [shape: f32[1,128], index: 10, kind: input, shape index: {}]   ;;  %s2716_s11 = inlined_call_operand.vmem [shape: f32[1,128], index: 11, kind: input, shape index: {}]   ;;  %s2717_s12 = inlined_call_operand.vmem [shape: f32[1,128], index: 12, kind: input, shape index: {}]   ;;  %s2718_s13 = inlined_call_operand.hbm [shape: bf16[128,128], index: 13, kind: input, shape index: {}]   ;;  %s2719_s14 = inlined_call_operand.vmem [shape: f32[1,128], index: 14, kind: input, shape index: {}]   ;;  %s2720_s15 = inlined_call_operand.vmem [shape: bf16[128,128], index: 15, kind: input, shape index: {}]   ;;  %s2721_s16 = inlined_call_operand.vmem [shape: bf16[128,128], index: 16, kind: input, shape index: {}]   ;;  %s2722_s17 = inlined_call_operand.vmem [shape: f32[1,128], index: 17, kind: input, shape index: {}]   ;;  %s2723_s18 = inlined_call_operand.vmem [shape: f32[8,128], index: 18, kind: output, shape index: {0}]   ;;  %s2724_s19 = inlined_call_operand.vmem [shape: f32[8,8], index: 19, kind: output, shape index: {1}]   ;;  %s2725_s20 = inlined_call_operand.vmem [shape: bf16[8,128], index: 20, kind: output, shape index: {2}]  }
   0x1   :  { %2730 = sst [smem:[#allocation17_spill]] %s2705_s0 }
   0x2   :  { %2731 = sst [smem:[#allocation18_spill]] %s2706_s1 }
   0x3   :  { %2732 = sst [smem:[#allocation19_spill]] %s2707_s2 }
   0x4   :  { %2733 = sst [smem:[#allocation20_spill]] %s2708_s3 }
   0x5   :  { %2734 = sst [smem:[#allocation21_spill]] %s2709_s4 }
   0x6   :  { %26 = vsyncpa [#allocation3], 0 }
   0x7   :  { %27 = vsyncpa [#allocation5], 0 }
   0x8   :  { %28 = vsyncpa [#allocation8], 0 }
   0x9   :  { %29 = vsyncpa [#allocation11], 0  ;;  %s2735_s23 = sld [smem:[#allocation21_spill]]  ;;  %s2209_s2 = smov [#allocation4]  }
   0xa   :  { %s55_s25 = sshll.u32 %s2209_s2, 4  ;;  %s79_s27 = sshll.u32 %s2711_s6, 4  ;;  %s56_s25 = int_to_ptr.vmem [resolvable:$true] %s55_s25  ;;  %s80_s27 = int_to_ptr.hbm [resolvable:$true] %s79_s27 }
   0xb   :  { %s2210_s28 = smov 64   ;;  %s2211_s4 = smov 4  }
   0xc   :  { %s2212_s29 = smov [#allocation7]   ;;  %s105_s1 = sshll.u32 %s2713_s8, 4  ;;  %s106_s1 = int_to_ptr.hbm [resolvable:$true] %s105_s1 }
   0xd   :  { %s81_s30 = sshll.u32 %s2212_s29, 4  ;;  %s2213_s3 = smov [#allocation10]   ;;  %s82_s30 = int_to_ptr.vmem [resolvable:$true] %s81_s30 }
   0xe   :  { %87 = dma.hbm_to_vmem [thread:$0]  %s80_s27, 1024, %s82_s30, [#allocation8], %s2210_s28, %s2210_s28, %s2211_s4  }
   0xf   :  { %s53_s24 = sshll.u32 %s2735_s23, 4  ;;  %s2736_s23 = sld [smem:[#allocation20_spill]]  ;;  %s54_s24 = int_to_ptr.hbm [resolvable:$true] %s53_s24 }
  0x10   :  { %61 = dma.hbm_to_vmem [thread:$0]  %s54_s24, 1024, %s56_s25, [#allocation5], %s2210_s28, %s2210_s28, %s2211_s4  }
  0x11   :  { %s107_s26 = sshll.u32 %s2213_s3, 4  ;;  %s2214_s24 = smov [#allocation2]   ;;  %s108_s26 = int_to_ptr.vmem [resolvable:$true] %s107_s26 }
  0x12   :  { %113 = dma.hbm_to_vmem [thread:$0]  %s106_s1, 1024, %s108_s26, [#allocation11], %s2210_s28, %s2210_s28, %s2211_s4  }
  0x13   :  { %s42_s8 = sshll.u32 %s2214_s24, 4  ;;  %s66_s0 = sshll.u32 %s2710_s5, 4  ;;  %s43_s8 = int_to_ptr.vmem [resolvable:$true] %s42_s8  ;;  %s67_s0 = int_to_ptr.hbm [resolvable:$true] %s66_s0 }
  0x14   :  { %s92_s21 = sshll.u32 %s2712_s7, 4  ;;  %s2215_s6 = smov [#allocation6]   ;;  %s93_s21 = int_to_ptr.hbm [resolvable:$true] %s92_s21 }
  0x15   :  { %s40_s2 = sshll.u32 %s2736_s23, 4  ;;  %s68_s22 = sshll.u32 %s2215_s6, 4  ;;  %s41_s2 = int_to_ptr.hbm [resolvable:$true] %s40_s2  ;;  %s69_s22 = int_to_ptr.vmem [resolvable:$true] %s68_s22 }
  0x16   :  { %48 = dma.hbm_to_vmem [thread:$0]  %s41_s2, 1024, %s43_s8, [#allocation3], %s2210_s28, %s2210_s28, %s2211_s4  }
  0x17   :  { %74 = dma.hbm_to_vmem [thread:$0]  %s67_s0, 1024, %s69_s22, [#allocation5], %s2210_s28, %s2210_s28, %s2211_s4  }
  0x18   :  { %s2216_s1 = smov [#allocation9]   ;;  %s126_s26 = sshll.u32 %s2718_s13, 4  ;;  %s127_s26 = int_to_ptr.hbm [resolvable:$true] %s126_s26 }
  0x19   :  { %s94_s5 = sshll.u32 %s2216_s1, 4  ;;  %s2217_s7 = smov [#allocation12]   ;;  %s95_s5 = int_to_ptr.vmem [resolvable:$true] %s94_s5 }
  0x1a   :  { %100 = dma.hbm_to_vmem [thread:$0]  %s93_s21, 1024, %s95_s5, [#allocation8], %s2210_s28, %s2210_s28, %s2211_s4  }
  0x1b   :  { %s128_s2 = sshll.u32 %s2217_s7, 4  ;;  %s129_s2 = int_to_ptr.vmem [resolvable:$true] %s128_s2 }
  0x1c   :  { %134 = dma.hbm_to_vmem [thread:$0]  %s127_s26, 1024, %s129_s2, [#allocation11], %s2210_s28, %s2210_s28, %s2211_s4  }
  0x1d   :  { %2201 = dma.done.wait [#allocation3], 1024  }
  0x1e   :  { %2202 = vsyncadd [#allocation3], 4294966272 }
  0x1f   :  { %2203 = dma.done.wait [#allocation5], 2048  }
  0x20   :  { %2204 = vsyncadd [#allocation5], 4294965248 }
  0x21   :  { %2205 = dma.done.wait [#allocation8], 2048  }
  0x22   :  { %2206 = vsyncadd [#allocation8], 4294965248 }
  0x23   :  { %2207 = dma.done.wait [#allocation11], 2048  }
  0x24   :  { %2208 = vsyncadd [#allocation11], 4294965248  ;;  %v1913_v0 = vld [vmem:[#allocation7 + $0x38] sm:$0xff]  ;;  %v1912_v4 = vld [vmem:[#allocation7 + $0x30] sm:$0xff]  ;;  %s2737_s4 = sld [smem:[#allocation18_spill]]  ;;  %vm909_vm8 = vcmask 1041409  }
  0x25   :  { %v1905_v1 = vld [vmem:[#allocation2 + $0x38] sm:$0xff]  ;;  %255 = vmatpush.bf16.msra.mxu0 %v1913_v0  ;;  %v1904_v5 = vld [vmem:[#allocation2 + $0x30] sm:$0xff]  ;;  %v1911_v8 = vld [vmem:[#allocation7 + $0x28] sm:$0xff]  ;;  %s2738_s25 = sld [smem:[#allocation17_spill]]  ;;  %vm911_vm9 = vcmask 1042434   ;;  %vm913_vm10 = vcmask 1043459  }
  0x26   :  { %v1929_v2 = vld [vmem:[#allocation9 + $0x38] sm:$0xff]  ;;  %316 = vmatpush.bf16.msra.mxu1 %v1905_v1  ;;  %v1928_v6 = vld [vmem:[#allocation9 + $0x30] sm:$0xff]  ;;  %v1903_v9 = vld [vmem:[#allocation2 + $0x28] sm:$0xff]  ;;  %s2739_s6 = sld [smem:[#allocation19_spill]]  ;;  %vm915_vm11 = vcmask 1044484   ;;  %vm2729_vm12 = vcmask 1045509  }
  0x27   :  { %v1921_v3 = vld [vmem:[#allocation4 + $0x38] sm:$0xff]  ;;  %433 = vmatpush.bf16.msra.mxu2 %v1929_v2  ;;  %v1920_v7 = vld [vmem:[#allocation4 + $0x30] sm:$0xff]  ;;  %v1927_v10 = vld [vmem:[#allocation9 + $0x28] sm:$0xff]  ;;  %vm2728_vm13 = vcmask 1046534   ;;  %vm2727_vm14 = vcmask 1047559   ;;  %vm924_vm15 = vcmask 64512  }
  0x28   :  { %494 = vmatpush.bf16.msra.mxu3 %v1921_v3  ;;  %v1919_v11 = vld [vmem:[#allocation4 + $0x28] sm:$0xff]  ;;  %v1910_v12 = vld [vmem:[#allocation7 + $0x20] sm:$0xff]  ;;  %v1909_v16 = vld [vmem:[#allocation7 + $0x18] sm:$0xff] }
  0x29   :  { %256 = vmatpush.bf16.msra.mxu0 %v1912_v4  ;;  %v1902_v13 = vld [vmem:[#allocation2 + $0x20] sm:$0xff]  ;;  %v1901_v17 = vld [vmem:[#allocation2 + $0x18] sm:$0xff]  ;;  %v1908_v20 = vld [vmem:[#allocation7 + $0x10] sm:$0xff] }
  0x2a   :  { %317 = vmatpush.bf16.msra.mxu1 %v1904_v5  ;;  %v1926_v14 = vld [vmem:[#allocation9 + $0x20] sm:$0xff]  ;;  %v1925_v18 = vld [vmem:[#allocation9 + $0x18] sm:$0xff]  ;;  %v1900_v21 = vld [vmem:[#allocation2 + $0x10] sm:$0xff] }
  0x2b   :  { %434 = vmatpush.bf16.msra.mxu2 %v1928_v6  ;;  %v1918_v15 = vld [vmem:[#allocation4 + $0x20] sm:$0xff]  ;;  %v1917_v19 = vld [vmem:[#allocation4 + $0x18] sm:$0xff]  ;;  %v1924_v22 = vld [vmem:[#allocation9 + $0x10] sm:$0xff] }
  0x2c   :  { %495 = vmatpush.bf16.msra.mxu3 %v1920_v7  ;;  %v1916_v23 = vld [vmem:[#allocation4 + $0x10] sm:$0xff]  ;;  %v1907_v24 = vld [vmem:[#allocation7 + $0x8] sm:$0xff]  ;;  %v1906_v28 = vld [vmem:[#allocation7] sm:$0xff] }
  0x2d   :  { %257 = vmatpush.bf16.msra.mxu0 %v1911_v8  ;;  %v1899_v25 = vld [vmem:[#allocation2 + $0x8] sm:$0xff]  ;;  %v1898_v29 = vld [vmem:[#allocation2] sm:$0xff]  ;;  %v1937_v34 = vld [vmem:[#allocation6 + $0x38] sm:$0xff] }
  0x2e   :  { %318 = vmatpush.bf16.msra.mxu1 %v1903_v9  ;;  %v1923_v26 = vld [vmem:[#allocation9 + $0x8] sm:$0xff]  ;;  %v2369_v30 = vld [vmem:[%s2737_s4] sm:$0xff]  ;;  %v1945_v35 = vld [vmem:[#allocation10 + $0x38] sm:$0xff] }
  0x2f   :  { %435 = vmatpush.bf16.msra.mxu2 %v1927_v10  ;;  %v1915_v27 = vld [vmem:[#allocation4 + $0x8] sm:$0xff]  ;;  %v171_v31 = vld [vmem:[%s2738_s25] sm:$0xff]  ;;  %v174_v36 = vpack.c.bf16 %v2369_v30, %v2369_v30  ;;  %v1936_v38 = vld [vmem:[#allocation6 + $0x30] sm:$0xff] }
  0x30   :  { %496 = vmatpush.bf16.msra.mxu3 %v1919_v11  ;;  %v1922_v32 = vld [vmem:[#allocation9] sm:$0xff]  ;;  %v173_v37 = vpack.c.bf16 %v171_v31, %v171_v31  ;;  %v1944_v39 = vld [vmem:[#allocation10 + $0x30] sm:$0xff]  ;;  %v1935_v40 = vld [vmem:[#allocation6 + $0x28] sm:$0xff] }
  0x31   :  { %258 = vmatpush.bf16.msra.mxu0 %v1910_v12  ;;  %v1914_v33 = vld [vmem:[#allocation4] sm:$0xff]  ;;  %v1943_v41 = vld [vmem:[#allocation10 + $0x28] sm:$0xff]  ;;  %v1933_v44 = vld [vmem:[#allocation6 + $0x18] sm:$0xff] }
  0x32   :  { %319 = vmatpush.bf16.msra.mxu1 %v1902_v13  ;;  %v1934_v42 = vld [vmem:[#allocation6 + $0x20] sm:$0xff]  ;;  %v1941_v45 = vld [vmem:[#allocation10 + $0x18] sm:$0xff]  ;;  %v1932_v46 = vld [vmem:[#allocation6 + $0x10] sm:$0xff] }
  0x33   :  { %436 = vmatpush.bf16.msra.mxu2 %v1926_v14  ;;  %v1942_v43 = vld [vmem:[#allocation10 + $0x20] sm:$0xff]  ;;  %v1940_v47 = vld [vmem:[#allocation10 + $0x10] sm:$0xff]  ;;  %v1931_v48 = vld [vmem:[#allocation6 + $0x8] sm:$0xff] }
  0x34   :  { %497 = vmatpush.bf16.msra.mxu3 %v1918_v15  ;;  %v1939_v49 = vld [vmem:[#allocation10 + $0x8] sm:$0xff]  ;;  %v1930_v50 = vld [vmem:[#allocation6] sm:$0xff]  ;;  %v1953_v52 = vld [vmem:[#allocation12 + $0x38] sm:$0xff] }
  0x35   :  { %259 = vmatpush.bf16.msra.mxu0 %v1909_v16  ;;  %v1938_v51 = vld [vmem:[#allocation10] sm:$0xff]  ;;  %v1961_v53 = vld [vmem:[%s2720_s15 + $0x38] sm:$0xff]  ;;  %v1952_v54 = vld [vmem:[#allocation12 + $0x30] sm:$0xff] }
  0x36   :  { %320 = vmatpush.bf16.msra.mxu1 %v1901_v17  ;;  %v1960_v55 = vld [vmem:[%s2720_s15 + $0x30] sm:$0xff]  ;;  %v1951_v56 = vld [vmem:[#allocation12 + $0x28] sm:$0xff]  ;;  %v1950_v58 = vld [vmem:[#allocation12 + $0x20] sm:$0xff] }
  0x37   :  { %437 = vmatpush.bf16.msra.mxu2 %v1925_v18  ;;  %v1959_v57 = vld [vmem:[%s2720_s15 + $0x28] sm:$0xff]  ;;  %v1983_v59 = vld [vmem:[%s2714_s9] ss:$0 sm:$0xff]  ;;  %v1949_v0 = vld [vmem:[#allocation12 + $0x18] sm:$0xff] }
  0x38   :  { %498 = vmatpush.bf16.msra.mxu3 %v1917_v19  ;;  %v1958_v60 = vld [vmem:[%s2720_s15 + $0x20] sm:$0xff]  ;;  %v1957_v1 = vld [vmem:[%s2720_s15 + $0x18] sm:$0xff]  ;;  %v1948_v5 = vld [vmem:[#allocation12 + $0x10] sm:$0xff] }
  0x39   :  { %260 = vmatpush.bf16.msra.mxu0 %v1908_v20  ;;  %v1984_v4 = vld [vmem:[%s2715_s10] ss:$0 sm:$0xff]  ;;  %v1956_v6 = vld [vmem:[%s2720_s15 + $0x10] sm:$0xff]  ;;  %v1947_v12 = vld [vmem:[#allocation12 + $0x8] sm:$0xff] }
  0x3a   :  { %321 = vmatpush.bf16.msra.mxu1 %v1900_v21  ;;  %v1955_v13 = vld [vmem:[%s2720_s15 + $0x8] sm:$0xff]  ;;  %v1946_v16 = vld [vmem:[#allocation12] sm:$0xff] }
  0x3b   :  { %438 = vmatpush.bf16.msra.mxu2 %v1924_v22  ;;  %v1954_v18 = vld [vmem:[%s2720_s15] sm:$0xff] }
  0x3c   :  { %499 = vmatpush.bf16.msra.mxu3 %v1916_v23 }
  0x3d   :  { %261 = vmatpush.bf16.msra.mxu0 %v1907_v24 }
  0x3e   :  { %322 = vmatpush.bf16.msra.mxu1 %v1899_v25 }
  0x3f   :  { %439 = vmatpush.bf16.msra.mxu2 %v1923_v26 }
  0x40   :  { %500 = vmatpush.bf16.msra.mxu3 %v1915_v27 }
  0x41   :  { %262 = vmatpush.bf16.msra.mxu0 %v1906_v28  ;;  %v1985_v28 = vld [vmem:[%s2716_s11] ss:$0 sm:$0xff] }
  0x42   :  { %323 = vmatpush.bf16.msra.mxu1 %v1898_v29 }
  0x43   :  { %440 = vmatpush.bf16.msra.mxu2 %v1922_v32  ;;  %v1986_v32 = vld [vmem:[%s2717_s12] ss:$0 sm:$0xff] }
  0x44   :  { %501 = vmatpush.bf16.msra.mxu3 %v1914_v33  ;;  %263 = vmatmul.bf16.vlgmr.msra.gmra.mxu0 %v174_v36 }
  0x45   :  { %599 = vmatpush.bf16.msrb.mxu0 %v1937_v34  ;;  %324 = vmatmul.bf16.vlgmr.msra.gmra.mxu1 %v173_v37 }
  0x46   :  { %680 = vmatpush.bf16.msrb.mxu1 %v1945_v35  ;;  %441 = vmatmul.bf16.vlgmr.msra.gmra.mxu2 %v174_v36 }
  0x47   :  { %502 = vmatmul.bf16.vlgmr.msra.gmra.mxu3 %v173_v37  ;;  %774 = vmatpush.bf16.msrb.mxu2 %v1953_v52 }
  0x49   :  { %600 = vmatpush.bf16.msrb.mxu0 %v1936_v38 }
  0x4a   :  { %681 = vmatpush.bf16.msrb.mxu1 %v1944_v39 }
  0x4b   :  { %775 = vmatpush.bf16.msrb.mxu2 %v1952_v54 }
  0x4d   :  { %601 = vmatpush.bf16.msrb.mxu0 %v1935_v40 }
  0x4e   :  { %682 = vmatpush.bf16.msrb.mxu1 %v1943_v41 }
  0x4f   :  { %776 = vmatpush.bf16.msrb.mxu2 %v1951_v56 }
  0x51   :  { %602 = vmatpush.bf16.msrb.mxu0 %v1934_v42 }
  0x52   :  { %683 = vmatpush.bf16.msrb.mxu1 %v1942_v43 }
  0x53   :  { %777 = vmatpush.bf16.msrb.mxu2 %v1950_v58 }
  0x55   :  { %603 = vmatpush.bf16.msrb.mxu0 %v1933_v44 }
  0x56   :  { %684 = vmatpush.bf16.msrb.mxu1 %v1941_v45 }
  0x57   :  { %778 = vmatpush.bf16.msrb.mxu2 %v1949_v0  ;;  %v705_v0 = vld [vmem:[%s2739_s6 + $0x20] sm:$0xff] }
  0x59   :  { %604 = vmatpush.bf16.msrb.mxu0 %v1932_v46 }
  0x5a   :  { %685 = vmatpush.bf16.msrb.mxu1 %v1940_v47 }
  0x5b   :  { %779 = vmatpush.bf16.msrb.mxu2 %v1948_v5 }
  0x5d   :  { %605 = vmatpush.bf16.msrb.mxu0 %v1931_v48 }
  0x5e   :  { %686 = vmatpush.bf16.msrb.mxu1 %v1939_v49 }
  0x5f   :  { %780 = vmatpush.bf16.msrb.mxu2 %v1947_v12 }
  0x61   :  { %606 = vmatpush.bf16.msrb.mxu0 %v1930_v50 }
  0x62   :  { %687 = vmatpush.bf16.msrb.mxu1 %v1938_v51 }
  0x63   :  { %781 = vmatpush.bf16.msrb.mxu2 %v1946_v16 }
  0x64   :  { %607 = vmatmul.bf16.vlgmr.msrb.gmra.mxu0 %v173_v37 }
  0x65   :  { %688 = vmatmul.bf16.vlgmr.msrb.gmra.mxu1 %v174_v36 }
  0x66   :  { %1563 = vmatpush.bf16.msra.mxu1 %v1961_v53 }
  0x67   :  { %1311 = vmatpush.msra.mxu2 %v705_v0 }
  0x6a   :  { %1564 = vmatpush.bf16.msra.mxu1 %v1960_v55 }
  0x6e   :  { %1565 = vmatpush.bf16.msra.mxu1 %v1959_v57 }
  0x72   :  { %1566 = vmatpush.bf16.msra.mxu1 %v1958_v60 }
  0x76   :  { %1567 = vmatpush.bf16.msra.mxu1 %v1957_v1  ;;  %v707_v1 = vld [vmem:[%s2739_s6 + $0x30] sm:$0xff] }
  0x7a   :  { %1568 = vmatpush.bf16.msra.mxu1 %v1956_v6 }
  0x7e   :  { %1569 = vmatpush.bf16.msra.mxu1 %v1955_v13 }
  0x82   :  { %1570 = vmatpush.bf16.msra.mxu1 %v1954_v18 }
  0xc1   :  { %v264_v61 = vpop.f32.mrf.mxu0 }
  0xc2   :  { %v325_v62 = vpop.f32.mrf.mxu1 }
  0xc3   :  { %v326_v63 = vadd.f32 %v325_v62, %v264_v61 }
  0xc5   :  { %v333_v2 = vadd.f32 %v1983_v59, %v326_v63  ;;  %v1987_v59 = vld [vmem:[%s2719_s14] ss:$0 sm:$0xff] }
  0xc6   :  { %v701_v63 = vld [vmem:[%s2739_s6] sm:$0xff] }
  0xc7   :  { %v1664_v3 = vmul.f32 -1.442695, %v333_v2  ;;  %1223 = vmatpush.msrb.mxu3 %v701_v63 }
  0xc9   :  { %1989 = vpow2.f32 %v1664_v3  ;;  %v442_v7 = vpop.f32.mrf.mxu2  ;;  %v266_v10 = vpop.f32.mrf.mxu0 }
  0xca   :  { %v503_v8 = vpop.f32.mrf.mxu3  ;;  %v327_v11 = vpop.f32.mrf.mxu1 }
  0xcb   :  { %v504_v9 = vadd.f32 %v503_v8, %v442_v7  ;;  %v2436_v7 = vld [vmem:[%s2739_s6 + $0x18] sm:$0xff] }
  0xcd   :  { %v511_v14 = vadd.f32 %v1984_v4, %v504_v9 }
  0xcf   :  { %v1729_v15 = vmul.f32 -1.442695, %v511_v14  ;;  %v1990_v17 = vpop.eup %1989 }
  0xd0   :  { %v337_v19 = vadd.f32 1.0, %v1990_v17 }
  0xd1   :  { %1991 = vpow2.f32 %v1729_v15  ;;  %v444_v20 = vpop.f32.mrf.mxu2 }
  0xd2   :  { %v505_v21 = vpop.f32.mrf.mxu3  ;;  %1993 = vrcp.f32 %v337_v19  ;;  %v349_v27 = vand.u32 2147483648, %v337_v19  ;;  %v347_v31 = vand.u32 2147483647, %v337_v19  ;;  %vm343_vm1 = vweird.f32 %v337_v19 }
  0xd4   :  { %v350_v37 = vor.u32 1.1754944e-38, %v349_v27  ;;  %vm348_vm3 = vcmp.eq.f32.partialorder %v347_v31, 8.507059e+37  ;;  %v2454_v31 = vld [vmem:[%s2739_s6 + $0x38] sm:$0xff] }
  0xd7   :  { %v1992_v22 = vpop.eup %1991 }
  0xd8   :  { %v515_v23 = vadd.f32 1.0, %v1992_v22  ;;  %v1994_v24 = vpop.eup %1993  ;;  %v2447_v22 = vld [vmem:[%s2739_s6 + $0x10] sm:$0xff] }
  0xd9   :  { %v339_v25 = vmul.f32 %v1994_v24, %v337_v19  ;;  %vm344_vm0 = vweird.f32 %v1994_v24  ;;  %v2442_v19 = vld [vmem:[%s2739_s6 + $0x28] sm:$0xff] }
  0xda   :  { %1995 = vrcp.f32 %v515_v23  ;;  %vm345_vm2 = vmor %vm343_vm1, %vm344_vm0  ;;  %v527_v45 = vand.u32 2147483648, %v515_v23  ;;  %v525_v47 = vand.u32 2147483647, %v515_v23  ;;  %vm521_vm5 = vweird.f32 %v515_v23 }
  0xdb   :  { %v340_v26 = vsub.f32 1.0, %v339_v25 }
  0xdc   :  { %v528_v50 = vor.u32 1.1754944e-38, %v527_v45  ;;  %vm526_vm7 = vcmp.eq.f32.partialorder %v525_v47, 8.507059e+37 }
  0xdd   :  { %v341_v29 = vmul.f32 %v1994_v24, %v340_v26 }
  0xdf   :  { %v342_v34 = vadd.f32 %v1994_v24, %v341_v29 }
  0xe0   :  { %v1996_v33 = vpop.eup %1995 }
  0xe1   :  { %v517_v35 = vmul.f32 %v1996_v33, %v515_v23  ;;  %v608_v36 = vpop.f32.mrf.mxu0  ;;  %v346_v40 = vsel %vm345_vm2, %v1994_v24, %v342_v34  ;;  %vm522_vm4 = vweird.f32 %v1996_v33  ;;  %v2218_v34 = vmov 0  }
  0xe2   :  { %v689_v38 = vpop.f32.mrf.mxu1  ;;  %v609_v39 = vadd.f32 %v1985_v28, %v608_v36  ;;  %v351_v42 = vsel %vm348_vm3, %v350_v37, %v346_v40  ;;  %vm523_vm6 = vmor %vm521_vm5, %vm522_vm4  ;;  %1980 = vset.pattern.permute.xlu0 %v2218_v34  ;;  %1981 = vset.pattern.permute.xlu1 %v2218_v34 }
  0xe3   :  { %v690_v41 = vadd.f32 %v1986_v32, %v689_v38  ;;  %v518_v43 = vsub.f32 1.0, %v517_v35  ;;  %1982 = vset.pattern.permute.xlu2 %v2218_v34 }
  0xe5   :  { %v693_v44 = vmul.f32 %v690_v41, %v351_v42  ;;  %v519_v46 = vmul.f32 %v1996_v33, %v518_v43 }
  0xe7   :  { %v694_v48 = vadd.f32 %v693_v44, %v609_v39  ;;  %v520_v49 = vadd.f32 %v1996_v33, %v519_v46 }
  0xe9   :  { %1997 = vtanh.f32 %v694_v48  ;;  %v610_v51 = vpop.f32.mrf.mxu0  ;;  %v524_v53 = vsel %vm523_vm6, %v1996_v33, %v520_v49 }
  0xea   :  { %v691_v52 = vpop.f32.mrf.mxu1  ;;  %v529_v54 = vsel %vm526_vm7, %v528_v50, %v524_v53 }
  0xeb   :  { %v696_v55 = vsub.f32 1.0, %v529_v54  ;;  %v698_v58 = vmul.f32 %v529_v54, %v2369_v30  ;;  %v702_v30 = vld [vmem:[%s2739_s6 + $0x8] sm:$0xff] }
  0xec   :  { %1245 = vmatpush.msra.mxu3 %v702_v30 }
  0xef   :  { %v1998_v56 = vpop.eup %1997 }
  0xf0   :  { %v697_v57 = vmul.f32 %v1998_v56, %v696_v55 }
  0xf2   :  { %v699_v60 = vadd.f32 %v698_v58, %v697_v57 }
  0xf4   :  { %v839_v61 = vmul.f32 %v1987_v59, %v699_v60  ;;  %700 = vst [vmem:[%s2723_s18] sm:$0xff] %v699_v60  ;;  %v709_v62 = vpack.c.bf16 %v699_v60, %v699_v60 }
  0xf6   :  { %840 = vadd.xlane.f32.xlu0 %v839_v61  ;;  %782 = vmatmul.bf16.vlgmr.msrb.gmra.mxu2 %v709_v62  ;;  %v899_v61 = vlaneseq }
  0xf7   :  { %1571 = vmatmul.bf16.vlgmr.msra.gmra.mxu1 %v709_v62  ;;  %1355 = vmatpush.msrb.mxu2 %v707_v1 }
 0x169   :  { %v841_v35 = vpop.xlane.xlu0 %840 }
 0x16a   :  { %v843_v36 = vperm.slane %v841_v35, 0  ;;  %v844_v39 = vperm.slane %v841_v35, 1  ;;  %v847_v43 = vperm.slane %v841_v35, 4  ;;  %v845_v44 = vperm.slane %v841_v35, 2 }
 0x16b   :  { %v846_v49 = vperm.slane %v841_v35, 3  ;;  %v850_v50 = vperm.slane %v841_v35, 7  ;;  %v849_v51 = vperm.slane %v841_v35, 6  ;;  %v848_v58 = vperm.slane %v841_v35, 5 }
 0x174   :  { %v2431_v2 = vpop.f32.mrf.mxu1 }
 0x179   :  { %v783_v3 = vpop.f32.mrf.mxu2 }
 0x17a   :  { %v795_v4 = vperm.slane %v783_v3, 0  ;;  %v790_v5 = vrot.slane %v783_v3, 3  ;;  %v788_v6 = vrot.slane %v783_v3, 1  ;;  %v792_v12 = vrot.slane %v783_v3, 5 }
 0x17b   :  { %v791_v15 = vrot.slane %v783_v3, 4  ;;  %v789_v16 = vrot.slane %v783_v3, 2  ;;  %v794_v26 = vrot.slane %v783_v3, 7  ;;  %v793_v27 = vrot.slane %v783_v3, 6 }
 0x17c   :  { %v1574_v8 = vpop.f32.mrf.mxu1  ;;  %v811_v9 = vmul.f32 %v795_v4, %v701_v63  ;;  %v798_v10 = vperm.slane %v790_v5, 0  ;;  %v796_v11 = vperm.slane %v788_v6, 0  ;;  %v800_v17 = vperm.slane %v792_v12, 0 }
 0x17d   :  { %v799_v20 = vperm.slane %v791_v15, 0  ;;  %v797_v21 = vperm.slane %v789_v16, 0  ;;  %v802_v28 = vperm.slane %v794_v26, 0  ;;  %v801_v29 = vperm.slane %v793_v27, 0 }
 0x17e   :  { %819 = vadd.xlane.f32.xlu0 %v811_v9  ;;  %v814_v13 = vmul.f32 %v798_v10, %v2436_v7  ;;  %v812_v14 = vmul.f32 %v796_v11, %v702_v30  ;;  %v816_v23 = vmul.f32 %v800_v17, %v2442_v19  ;;  %v2475_v63 = vand.u32 127, %v899_v61 }
 0x17f   :  { %v815_v24 = vmul.f32 %v799_v20, %v705_v0  ;;  %v813_v25 = vmul.f32 %v797_v21, %v2447_v22  ;;  %v818_v32 = vmul.f32 %v802_v28, %v2454_v31  ;;  %v817_v33 = vmul.f32 %v801_v29, %v707_v1 }
 0x180   :  { %825 = vadd.xlane.f32.xlu2 %v814_v13  ;;  %821 = vadd.xlane.f32.xlu1 %v812_v14 }
 0x181   :  { %v785_v18 = vpop.f32.mrf.mxu2 }
 0x186   :  { %829 = vadd.xlane.f32.xlu0 %v816_v23 }
 0x188   :  { %827 = vadd.xlane.f32.xlu2 %v815_v24  ;;  %823 = vadd.xlane.f32.xlu1 %v813_v25 }
 0x190   :  { %833 = vadd.xlane.f32.xlu2 %v818_v32  ;;  %831 = vadd.xlane.f32.xlu1 %v817_v33 }
 0x1f1   :  { %v820_v37 = vpop.xlane.xlu0 %819 }
 0x1f2   :  { %v2457_v38 = vadd.f32 %v843_v36, %v820_v37 }
 0x1f3   :  { %v826_v40 = vpop.xlane.xlu2 %825  ;;  %v822_v41 = vpop.xlane.xlu1 %821 }
 0x1f4   :  { %v2459_v42 = vadd.f32 %v844_v39, %v822_v41  ;;  %876 = vperm.xlu0 %1980, %v2457_v38   ;;  %v862_v54 = vadd.f32 %v846_v49, %v826_v40 }
 0x1f6   :  { %879 = vperm.xlu1 %1981, %v2459_v42  }
 0x1f9   :  { %v830_v57 = vpop.xlane.xlu0 %829 }
 0x1fa   :  { %v864_v59 = vadd.f32 %v848_v58, %v830_v57 }
 0x1fb   :  { %v828_v45 = vpop.xlane.xlu2 %827  ;;  %v824_v46 = vpop.xlane.xlu1 %823 }
 0x1fc   :  { %v2463_v47 = vadd.f32 %v847_v43, %v828_v45  ;;  %v2465_v48 = vadd.f32 %v845_v44, %v824_v46 }
 0x1fe   :  { %888 = vperm.xlu1 %1981, %v2463_v47   ;;  %882 = vperm.xlu2 %1982, %v2465_v48  }
 0x203   :  { %v834_v52 = vpop.xlane.xlu2 %833  ;;  %v832_v53 = vpop.xlane.xlu1 %831 }
 0x204   :  { %v2469_v55 = vadd.f32 %v850_v50, %v834_v52  ;;  %v2471_v56 = vadd.f32 %v849_v51, %v832_v53 }
 0x206   :  { %897 = vperm.xlu0 %1980, %v2469_v55   ;;  %885 = vperm.xlu2 %1982, %v862_v54  }
 0x207   :  { %894 = vperm.xlu1 %1981, %v2471_v56  }
 0x20e   :  { %891 = vperm.xlu2 %1982, %v864_v59  }
 0x258   :  { %v883_v60 = vpop.permute.xlu2 %882 }
 0x259   :  { %v903_v6 = vperm.slane %v883_v60, %v2475_v63 }
 0x260   :  { %v886_v30 = vpop.permute.xlu2 %885 }
 0x261   :  { %v904_v10 = vperm.slane %v886_v30, %v2475_v63 }
 0x266   :  { %v877_v0 = vpop.permute.xlu0 %876 }
 0x267   :  { %v901_v3 = vperm.slane %v877_v0, %v2475_v63 }
 0x268   :  { %v880_v62 = vpop.permute.xlu1 %879  ;;  %v892_v11 = vpop.permute.xlu2 %891 }
 0x269   :  { %v902_v1 = vperm.slane %v880_v62, %v2475_v63  ;;  %v906_v15 = vperm.slane %v892_v11, %v2475_v63 }
 0x26b   :  { %v910_v5 = vsel %vm909_vm8, %v902_v1, %v901_v3 }
 0x26c   :  { %v912_v8 = vsel %vm911_vm9, %v903_v6, %v910_v5 }
 0x26d   :  { %v914_v12 = vsel %vm913_vm10, %v904_v10, %v912_v8 }
 0x270   :  { %v889_v4 = vpop.permute.xlu1 %888 }
 0x271   :  { %v905_v9 = vperm.slane %v889_v4, %v2475_v63 }
 0x273   :  { %v916_v13 = vsel %vm915_vm11, %v905_v9, %v914_v12 }
 0x274   :  { %v918_v20 = vsel %vm2729_vm12, %v906_v15, %v916_v13 }
 0x278   :  { %v898_v14 = vpop.permute.xlu0 %897 }
 0x279   :  { %v908_v16 = vperm.slane %v898_v14, %v2475_v63  ;;  %v895_v17 = vpop.permute.xlu1 %894 }
 0x27a   :  { %v907_v18 = vperm.slane %v895_v17, %v2475_v63 }
 0x27c   :  { %v920_v21 = vsel %vm2728_vm13, %v907_v18, %v918_v20 }
 0x27d   :  { %v922_v23 = vsel %vm2727_vm14, %v908_v16, %v920_v21 }
 0x27e   :  { %v925_v24 = vsel %vm924_vm15, %v922_v23, -inf }
 0x27f   :  { %926 = vmax.xlane.f32.xlu2 %v925_v24 }
 0x2f2   :  { %v927_v25 = vpop.xlane.xlu2 %926 }
 0x2f3   :  { %v930_v26 = vperm.slane %v927_v25, 1  ;;  %v929_v27 = vperm.slane %v927_v25, 0  ;;  %v932_v32 = vperm.slane %v927_v25, 3  ;;  %v931_v33 = vperm.slane %v927_v25, 2 }
 0x2f4   :  { %v934_v40 = vperm.slane %v927_v25, 5  ;;  %v933_v43 = vperm.slane %v927_v25, 4  ;;  %v936_v49 = vperm.slane %v927_v25, 7  ;;  %v935_v50 = vperm.slane %v927_v25, 6 }
 0x2f5   :  { %v946_v28 = vsub.f32 %v2459_v42, %v930_v26  ;;  %v945_v29 = vsub.f32 %v2457_v38, %v929_v27  ;;  %v948_v36 = vsub.f32 %v862_v54, %v932_v32  ;;  %v947_v37 = vsub.f32 %v2465_v48, %v931_v33 }
 0x2f6   :  { %v950_v38 = vsub.f32 %v864_v59, %v934_v40  ;;  %v949_v42 = vsub.f32 %v2463_v47, %v933_v43  ;;  %v952_v53 = vsub.f32 %v2469_v55, %v936_v49  ;;  %v951_v54 = vsub.f32 %v2471_v56, %v935_v50 }
 0x2f7   :  { %v955_v34 = vmul.f32 1.442695, %v946_v28  ;;  %v953_v35 = vmul.f32 1.442695, %v945_v29  ;;  %v959_v39 = vmul.f32 1.442695, %v948_v36 }
 0x2f8   :  { %v957_v41 = vmul.f32 1.442695, %v947_v37  ;;  %v963_v46 = vmul.f32 1.442695, %v950_v38  ;;  %v961_v48 = vmul.f32 1.442695, %v949_v42 }
 0x2f9   :  { %1999 = vpow2.f32 %v955_v34  ;;  %v967_v57 = vmul.f32 1.442695, %v952_v53  ;;  %v965_v47 = vmul.f32 1.442695, %v951_v54 }
 0x2fa   :  { %2001 = vpow2.f32 %v953_v35 }
 0x2fb   :  { %2003 = vpow2.f32 %v959_v39 }
 0x2fc   :  { %2005 = vpow2.f32 %v957_v41 }
 0x2fd   :  { %2007 = vpow2.f32 %v963_v46 }
 0x2fe   :  { %2009 = vpow2.f32 %v961_v48 }
 0x2ff   :  { %v2496_v44 = vpop.eup %1999  ;;  %2011 = vpow2.f32 %v967_v57 }
 0x300   :  { %v2498_v45 = vpop.eup %2001  ;;  %981 = vperm.xlu0 %1980, %v2496_v44   ;;  %2013 = vpow2.f32 %v965_v47 }
 0x301   :  { %978 = vperm.xlu1 %1981, %v2498_v45   ;;  %v2503_v51 = vpop.eup %2003 }
 0x302   :  { %v2505_v52 = vpop.eup %2005 }
 0x303   :  { %v2511_v58 = vpop.eup %2007 }
 0x304   :  { %v2513_v59 = vpop.eup %2009 }
 0x305   :  { %v2517_v60 = vpop.eup %2011 }
 0x306   :  { %v2519_v61 = vpop.eup %2013 }
 0x308   :  { %987 = vperm.xlu0 %1980, %v2503_v51  }
 0x309   :  { %984 = vperm.xlu1 %1981, %v2505_v52  }
 0x310   :  { %993 = vperm.xlu0 %1980, %v2511_v58  }
 0x311   :  { %990 = vperm.xlu1 %1981, %v2513_v59  }
 0x318   :  { %999 = vperm.xlu0 %1980, %v2517_v60  }
 0x319   :  { %996 = vperm.xlu1 %1981, %v2519_v61  }
 0x372   :  { %v982_v55 = vpop.permute.xlu0 %981 }
 0x373   :  { %v979_v56 = vpop.permute.xlu1 %978  ;;  %v1002_v0 = vperm.slane %v982_v55, %v2475_v63 }
 0x374   :  { %v1001_v1 = vperm.slane %v979_v56, %v2475_v63 }
 0x376   :  { %v1009_v6 = vsel %vm909_vm8, %v1002_v0, %v1001_v1 }
 0x37a   :  { %v988_v62 = vpop.permute.xlu0 %987 }
 0x37b   :  { %v985_v30 = vpop.permute.xlu1 %984  ;;  %v1004_v8 = vperm.slane %v988_v62, %v2475_v63 }
 0x37c   :  { %v1003_v3 = vperm.slane %v985_v30, %v2475_v63 }
 0x37e   :  { %v1010_v9 = vsel %vm911_vm9, %v1003_v3, %v1009_v6 }
 0x37f   :  { %v1011_v12 = vsel %vm913_vm10, %v1004_v8, %v1010_v9 }
 0x382   :  { %v994_v4 = vpop.permute.xlu0 %993 }
 0x383   :  { %v991_v5 = vpop.permute.xlu1 %990  ;;  %v1006_v11 = vperm.slane %v994_v4, %v2475_v63 }
 0x384   :  { %v1005_v10 = vperm.slane %v991_v5, %v2475_v63 }
 0x386   :  { %v1012_v13 = vsel %vm915_vm11, %v1005_v10, %v1011_v12 }
 0x387   :  { %v1013_v18 = vsel %vm2729_vm12, %v1006_v11, %v1012_v13 }
 0x38a   :  { %v1000_v14 = vpop.permute.xlu0 %999 }
 0x38b   :  { %v1008_v15 = vperm.slane %v1000_v14, %v2475_v63  ;;  %v997_v16 = vpop.permute.xlu1 %996 }
 0x38c   :  { %v1007_v17 = vperm.slane %v997_v16, %v2475_v63 }
 0x38e   :  { %v1014_v20 = vsel %vm2728_vm13, %v1007_v17, %v1013_v18 }
 0x38f   :  { %v1015_v21 = vsel %vm2727_vm14, %v1008_v15, %v1014_v20 }
 0x390   :  { %v1017_v23 = vsel %vm924_vm15, %v1015_v21, 0.0 }
 0x391   :  { %1018 = vadd.xlane.f32.xlu1 %v1017_v23 }
 0x404   :  { %v1019_v24 = vpop.xlane.xlu1 %1018 }
 0x405   :  { %v1021_v25 = vperm.slane %v1019_v24, 0  ;;  %v1022_v26 = vperm.slane %v1019_v24, 1  ;;  %v2539_v27 = vperm.slane %v1019_v24, 2  ;;  %v2541_v28 = vperm.slane %v1019_v24, 3 }
 0x406   :  { %v2543_v29 = vperm.slane %v1019_v24, 5  ;;  %v2546_v32 = vperm.slane %v1019_v24, 7  ;;  %v2550_v36 = vperm.slane %v1019_v24, 4  ;;  %v2552_v40 = vperm.slane %v1019_v24, 6 }
 0x407   :  { %2015 = vrcp.f32 %v1021_v25  ;;  %v1061_v33 = vand.u32 2147483647, %v1022_v26  ;;  %v1063_v34 = vand.u32 2147483648, %v1022_v26  ;;  %v1046_v37 = vand.u32 2147483647, %v1021_v25 }
 0x408   :  { %2017 = vrcp.f32 %v1022_v26  ;;  %vm1057_vm0 = vweird.f32 %v1022_v26  ;;  %vm1042_vm1 = vweird.f32 %v1021_v25  ;;  %v1048_v42 = vand.u32 2147483648, %v1021_v25 }
 0x409   :  { %2019 = vrcp.f32 %v2539_v27  ;;  %vm2559_vm2 = vcmp.eq.f32.partialorder %v1061_v33, 8.507059e+37  ;;  %v1064_v48 = vor.u32 1.1754944e-38, %v1063_v34  ;;  %vm2566_vm3 = vcmp.eq.f32.partialorder %v1046_v37, 8.507059e+37 }
 0x40a   :  { %2021 = vrcp.f32 %v2541_v28  ;;  %vm1117_vm4 = vweird.f32 %v2543_v29  ;;  %v1049_v0 = vor.u32 1.1754944e-38, %v1048_v42  ;;  %v1123_v5 = vand.u32 2147483648, %v2543_v29 }
 0x40b   :  { %2023 = vrcp.f32 %v2543_v29  ;;  %v1078_v8 = vand.u32 2147483648, %v2539_v27  ;;  %v1076_v24 = vand.u32 2147483647, %v2539_v27  ;;  %v1121_v33 = vand.u32 2147483647, %v2543_v29 }
 0x40c   :  { %2025 = vrcp.f32 %v2546_v32 }
 0x40d   :  { %v2016_v35 = vpop.eup %2015  ;;  %2027 = vrcp.f32 %v2550_v36 }
 0x40e   :  { %v2018_v39 = vpop.eup %2017  ;;  %v1038_v41 = vmul.f32 %v2016_v35, %v1021_v25  ;;  %vm1043_vm5 = vweird.f32 %v2016_v35  ;;  %2029 = vrcp.f32 %v2552_v40 }
 0x40f   :  { %v2555_v43 = vpop.eup %2019  ;;  %v1053_v38 = vmul.f32 %v2018_v39, %v1022_v26  ;;  %vm1058_vm6 = vweird.f32 %v2018_v39  ;;  %vm1044_vm7 = vmor %vm1042_vm1, %vm1043_vm5  ;;  %vm1147_vm5 = vweird.f32 %v2546_v32 }
 0x410   :  { %v2557_v46 = vpop.eup %2021  ;;  %v1039_v50 = vsub.f32 1.0, %v1038_v41  ;;  %v1068_v53 = vmul.f32 %v2555_v43, %v2539_v27  ;;  %vm1073_vm14 = vweird.f32 %v2555_v43  ;;  %vm1059_vm13 = vmor %vm1057_vm0, %vm1058_vm6  ;;  %vm1072_vm0 = vweird.f32 %v2539_v27 }
 0x411   :  { %v1054_v54 = vsub.f32 1.0, %v1053_v38  ;;  %v2024_v47 = vpop.eup %2023  ;;  %v1083_v62 = vmul.f32 %v2557_v46, %v2541_v28 }
 0x412   :  { %v1040_v55 = vmul.f32 %v2016_v35, %v1039_v50  ;;  %v1069_v56 = vsub.f32 1.0, %v1068_v53  ;;  %v1113_v1 = vmul.f32 %v2024_v47, %v2543_v29  ;;  %v2574_v3 = vpop.eup %2025  ;;  %vm1118_vm12 = vweird.f32 %v2024_v47 }
 0x413   :  { %v1055_v30 = vmul.f32 %v2018_v39, %v1054_v54  ;;  %v1143_v11 = vmul.f32 %v2574_v3, %v2546_v32  ;;  %v1084_v14 = vsub.f32 1.0, %v1083_v62  ;;  %v2585_v15 = vpop.eup %2027  ;;  %vm1119_vm1 = vmor %vm1117_vm4, %vm1118_vm12  ;;  %vm1088_vm12 = vweird.f32 %v2557_v46 }
 0x414   :  { %v1041_v4 = vadd.f32 %v2016_v35, %v1040_v55  ;;  %v1070_v6 = vmul.f32 %v2555_v43, %v1069_v56  ;;  %v1114_v10 = vsub.f32 1.0, %v1113_v1  ;;  %v1098_v27 = vmul.f32 %v2585_v15, %v2550_v36  ;;  %v2030_v42 = vpop.eup %2029 }
 0x415   :  { %v1056_v9 = vadd.f32 %v2018_v39, %v1055_v30  ;;  %v1144_v20 = vsub.f32 1.0, %v1143_v11  ;;  %v1085_v34 = vmul.f32 %v2557_v46, %v1084_v14  ;;  %v1153_v53 = vand.u32 2147483648, %v2546_v32 }
 0x416   :  { %v1045_v12 = vsel %vm1044_vm7, %v2016_v35, %v1041_v4  ;;  %v1071_v13 = vadd.f32 %v2555_v43, %v1070_v6  ;;  %v1115_v18 = vmul.f32 %v2024_v47, %v1114_v10  ;;  %v1079_v35 = vor.u32 1.1754944e-38, %v1078_v8 }
 0x417   :  { %v1060_v16 = vsel %vm1059_vm13, %v2018_v39, %v1056_v9  ;;  %v1050_v17 = vsel %vm2566_vm3, %v1049_v0, %v1045_v12  ;;  %vm1074_vm13 = vmor %vm1072_vm0, %vm1073_vm14  ;;  %v1145_v37 = vmul.f32 %v2574_v3, %v1144_v20  ;;  %v1124_v39 = vor.u32 1.1754944e-38, %v1123_v5 }
 0x418   :  { %v1065_v21 = vsel %vm2559_vm2, %v1064_v48, %v1060_v16  ;;  %v1051_v23 = vmul.f32 %v2498_v45, %v1050_v17  ;;  %v1116_v26 = vadd.f32 %v2024_v47, %v1115_v18  ;;  %v1075_v45 = vsel %vm1074_vm13, %v2555_v43, %v1071_v13 }
 0x419   :  { %v1066_v25 = vmul.f32 %v2496_v44, %v1065_v21  ;;  %vm1077_vm2 = vcmp.eq.f32.partialorder %v1076_v24, 8.507059e+37  ;;  %vm1122_vm14 = vcmp.eq.f32.partialorder %v1121_v33, 8.507059e+37  ;;  %v1086_v29 = vadd.f32 %v2557_v46, %v1085_v34 }
 0x41a   :  { %1166 = vperm.xlu0 %1980, %v1051_v23   ;;  %v1120_v44 = vsel %vm1119_vm1, %v2024_v47, %v1116_v26  ;;  %v1080_v41 = vsel %vm1077_vm2, %v1079_v35, %v1075_v45  ;;  %v1099_v43 = vsub.f32 1.0, %v1098_v27  ;;  %v1146_v49 = vadd.f32 %v2574_v3, %v1145_v37 }
 0x41b   :  { %1169 = vperm.xlu2 %1982, %v1066_v25   ;;  %v1125_v38 = vsel %vm1122_vm14, %v1124_v39, %v1120_v44  ;;  %vm1148_vm3 = vweird.f32 %v2574_v3  ;;  %v1093_v48 = vand.u32 2147483648, %v2541_v28  ;;  %v1081_v50 = vmul.f32 %v2505_v52, %v1080_v41  ;;  %v1968_v39 = vld [vmem:[%s2721_s16 + $0x30] sm:$0xff] }
 0x41c   :  { %vm1087_vm4 = vweird.f32 %v2541_v28  ;;  %v1091_v54 = vand.u32 2147483647, %v2541_v28  ;;  %v1126_v57 = vmul.f32 %v2511_v58, %v1125_v38  ;;  %v1151_v47 = vand.u32 2147483647, %v2546_v32  ;;  %vm1149_vm7 = vmor %vm1147_vm5, %vm1148_vm3  ;;  %v1967_v38 = vld [vmem:[%s2721_s16 + $0x28] sm:$0xff] }
 0x41d   :  { %vm1089_vm6 = vmor %vm1087_vm4, %vm1088_vm12  ;;  %v1100_v56 = vmul.f32 %v2585_v15, %v1099_v43  ;;  %v1128_v52 = vmul.f32 %v2030_v42, %v2552_v40  ;;  %v1150_v62 = vsel %vm1149_vm7, %v2574_v3, %v1146_v49  ;;  %v1094_v30 = vor.u32 1.1754944e-38, %v1093_v48  ;;  %v1964_v49 = vld [vmem:[%s2721_s16 + $0x10] sm:$0xff] }
 0x41e   :  { %v1090_v55 = vsel %vm1089_vm6, %v2557_v46, %v1086_v29  ;;  %v1154_v28 = vor.u32 1.1754944e-38, %v1153_v53  ;;  %vm1092_vm0 = vcmp.eq.f32.partialorder %v1091_v54, 8.507059e+37  ;;  %vm1152_vm13 = vcmp.eq.f32.partialorder %v1151_v47, 8.507059e+37  ;;  %v1966_v29 = vld [vmem:[%s2721_s16 + $0x20] sm:$0xff] }
 0x41f   :  { %v1095_v58 = vsel %vm1092_vm0, %v1094_v30, %v1090_v55  ;;  %v1101_v32 = vadd.f32 %v2585_v15, %v1100_v56  ;;  %vm1103_vm1 = vweird.f32 %v2585_v15  ;;  %v1129_v1 = vsub.f32 1.0, %v1128_v52  ;;  %v1962_v53 = vld [vmem:[%s2721_s16] sm:$0xff] }
 0x420   :  { %v1155_v0 = vsel %vm1152_vm13, %v1154_v28, %v1150_v62  ;;  %v1108_v46 = vand.u32 2147483648, %v2550_v36  ;;  %v1096_v4 = vmul.f32 %v2503_v51, %v1095_v58  ;;  %vm1102_vm2 = vweird.f32 %v2550_v36 }
 0x421   :  { %v1106_v5 = vand.u32 2147483647, %v2550_v36  ;;  %v1156_v3 = vmul.f32 %v2517_v60, %v1155_v0  ;;  %vm1104_vm14 = vmor %vm1102_vm2, %vm1103_vm1  ;;  %v1130_v8 = vmul.f32 %v2030_v42, %v1129_v1  ;;  %vm1133_vm3 = vweird.f32 %v2030_v42 }
 0x422   :  { %1172 = vperm.xlu0 %1980, %v1081_v50   ;;  %v1105_v6 = vsel %vm1104_vm14, %v2585_v15, %v1101_v32  ;;  %v1109_v9 = vor.u32 1.1754944e-38, %v1108_v46  ;;  %v1138_v12 = vand.u32 2147483648, %v2552_v40  ;;  %vm1132_vm4 = vweird.f32 %v2552_v40  ;;  %v1963_v50 = vld [vmem:[%s2721_s16 + $0x8] sm:$0xff] }
 0x423   :  { %1181 = vperm.xlu2 %1982, %v1126_v57   ;;  %vm1107_vm12 = vcmp.eq.f32.partialorder %v1106_v5, 8.507059e+37  ;;  %v1131_v11 = vadd.f32 %v2030_v42, %v1130_v8  ;;  %v1136_v36 = vand.u32 2147483647, %v2552_v40  ;;  %vm1134_vm5 = vmor %vm1132_vm4, %vm1133_vm3  ;;  %vm2744_vm7 = vcmask 1045509  }
 0x424   :  { %v1110_v10 = vsel %vm1107_vm12, %v1109_v9, %v1105_v6  ;;  %v1139_v13 = vor.u32 1.1754944e-38, %v1138_v12  ;;  %vm2745_vm0 = vcmask 1046534   ;;  %vm2746_vm13 = vcmask 1047559  }
 0x425   :  { %v1111_v51 = vmul.f32 %v2513_v59, %v1110_v10  ;;  %v1135_v60 = vsel %vm1134_vm5, %v2030_v42, %v1131_v11  ;;  %vm1137_vm6 = vcmp.eq.f32.partialorder %v1136_v36, 8.507059e+37  ;;  %v1965_v42 = vld [vmem:[%s2721_s16 + $0x18] sm:$0xff]  ;;  %vm2748_vm1 = vmmov %vm2745_vm0 }
 0x426   :  { %v1140_v14 = vsel %vm1137_vm6, %v1139_v13, %v1135_v60  ;;  %vm2749_vm2 = vmmov %vm2746_vm13 }
 0x427   :  { %v1141_v15 = vmul.f32 %v2519_v61, %v1140_v14 }
 0x42a   :  { %1175 = vperm.xlu0 %1980, %v1096_v4  }
 0x42b   :  { %1187 = vperm.xlu2 %1982, %v1156_v3  }
 0x432   :  { %1178 = vperm.xlu0 %1980, %v1111_v51  }
 0x43a   :  { %1184 = vperm.xlu0 %1980, %v1141_v15  }
 0x475   :  { %v1170_v59 = vpop.permute.xlu2 %1169 }
 0x476   :  { %v1190_v40 = vperm.slane %v1170_v59, %v2475_v63 }
 0x47d   :  { %v1182_v61 = vpop.permute.xlu2 %1181 }
 0x47e   :  { %v1194_v45 = vperm.slane %v1182_v61, %v2475_v63  ;;  %v1988_v61 = vld [vmem:[%s2722_s17] ss:$0 sm:$0xff] }
 0x485   :  { %v1188_v33 = vpop.permute.xlu2 %1187 }
 0x486   :  { %v1196_v44 = vperm.slane %v1188_v33, %v2475_v63 }
 0x48c   :  { %v1167_v16 = vpop.permute.xlu0 %1166 }
 0x48d   :  { %v1189_v17 = vperm.slane %v1167_v16, %v2475_v63 }
 0x48f   :  { %1826 = vmatmul.msk.f32.vlgmr.msrb.gmra.mxu3 %vm924_vm15, %v1189_v17  ;;  %v1197_v25 = vsel %vm909_vm8, %v1190_v40, %v1189_v17 }
 0x490   :  { %1267 = vmatpush.msrb.mxu3 %v2447_v22 }
 0x494   :  { %v1173_v18 = vpop.permute.xlu0 %1172 }
 0x495   :  { %v1191_v21 = vperm.slane %v1173_v18, %v2475_v63 }
 0x497   :  { %1827 = vmatmul.msk.f32.vlgmr.msra.gmra.mxu3 %vm924_vm15, %v1190_v40 }
 0x498   :  { %1289 = vmatpush.msra.mxu3 %v2436_v7  ;;  %v1198_v7 = vsel %vm911_vm9, %v1191_v21, %v1197_v25 }
 0x49c   :  { %v1176_v20 = vpop.permute.xlu0 %1175 }
 0x49d   :  { %v1192_v24 = vperm.slane %v1176_v20, %v2475_v63 }
 0x49f   :  { %1828 = vmatmul.msk.f32.vlgmr.msrb.gmra.mxu3 %vm924_vm15, %v1191_v21  ;;  %v1199_v26 = vsel %vm913_vm10, %v1192_v24, %v1198_v7 }
 0x4a0   :  { %1333 = vmatpush.msrb.mxu3 %v2442_v19 }
 0x4a4   :  { %v1179_v23 = vpop.permute.xlu0 %1178 }
 0x4a5   :  { %v1193_v22 = vperm.slane %v1179_v23, %v2475_v63 }
 0x4a7   :  { %1829 = vmatmul.msk.f32.vlgmr.msra.gmra.mxu3 %vm924_vm15, %v1192_v24  ;;  %1830 = vmatmul.msk.f32.vlgmr.msra.gmra.mxu2 %vm924_vm15, %v1193_v22  ;;  %v1200_v19 = vsel %vm915_vm11, %v1193_v22, %v1199_v26 }
 0x4a8   :  { %1377 = vmatpush.msra.mxu3 %v2454_v31  ;;  %v1201_v35 = vsel %vm2744_vm7, %v1194_v45, %v1200_v19 }
 0x4ac   :  { %v1185_v34 = vpop.permute.xlu0 %1184 }
 0x4ad   :  { %v1195_v27 = vperm.slane %v1185_v34, %v2475_v63  ;;  %v1969_v63 = vld [vmem:[%s2721_s16 + $0x38] sm:$0xff] }
 0x4ae   :  { %1502 = vmatpush.bf16.msra.mxu0 %v1969_v63 }
 0x4af   :  { %v1202_v37 = vsel %vm2745_vm0, %v1195_v27, %v1201_v35  ;;  %1831 = vmatmul.msk.f32.vlgmr.msrb.gmra.mxu3 %vm924_vm15, %v1194_v45  ;;  %1832 = vmatmul.msk.f32.vlgmr.msrb.gmra.mxu2 %vm924_vm15, %v1195_v27 }
 0x4b0   :  { %v1203_v31 = vsel %vm2746_vm13, %v1196_v44, %v1202_v37 }
 0x4b1   :  { %1205 = vst.msk [vmem:[%s2724_s19] sm:$0xff] %vm924_vm15, %v1203_v31 }
 0x4b2   :  { %1503 = vmatpush.bf16.msra.mxu0 %v1968_v39 }
 0x4b6   :  { %1504 = vmatpush.bf16.msra.mxu0 %v1967_v38 }
 0x4b7   :  { %1833 = vmatmul.msk.f32.vlgmr.msra.gmra.mxu3 %vm924_vm15, %v1196_v44  ;;  %vm2747_vm15 = vmmov %vm2744_vm7 }
 0x4ba   :  { %1505 = vmatpush.bf16.msra.mxu0 %v1966_v29 }
 0x4be   :  { %1506 = vmatpush.bf16.msra.mxu0 %v1965_v42 }
 0x4c2   :  { %1507 = vmatpush.bf16.msra.mxu0 %v1964_v49 }
 0x4c6   :  { %1508 = vmatpush.bf16.msra.mxu0 %v1963_v50 }
 0x4ca   :  { %1509 = vmatpush.bf16.msra.mxu0 %v1962_v53 }
 0x512   :  { %v1225_v41 = vpop.f32.mrf.mxu3 }
 0x513   :  { %v1398_v28 = vpack.c.bf16 %v1225_v41, %v1225_v41 }
 0x515   :  { %v1430_v6 = vunpack.c.l.b16 %v1398_v28 }
 0x51a   :  { %v1247_v43 = vpop.f32.mrf.mxu3 }
 0x51b   :  { %v1399_v47 = vpack.c.bf16 %v1247_v43, %v1247_v43 }
 0x51d   :  { %v1431_v52 = vunpack.c.l.b16 %v1399_v47 }
 0x51f   :  { %v1438_v1 = vrot.slane %v1431_v52, 7 }
 0x521   :  { %v1439_v10 = vsel %vm909_vm8, %v1438_v1, %v1430_v6 }
 0x522   :  { %v1269_v48 = vpop.f32.mrf.mxu3 }
 0x523   :  { %v1400_v55 = vpack.c.bf16 %v1269_v48, %v1269_v48 }
 0x525   :  { %v1432_v62 = vunpack.c.l.b16 %v1400_v55 }
 0x527   :  { %v1440_v4 = vrot.slane %v1432_v62, 6 }
 0x529   :  { %v1441_v11 = vsel %vm911_vm9, %v1440_v4, %v1439_v10 }
 0x52a   :  { %v1291_v54 = vpop.f32.mrf.mxu3  ;;  %v1313_v57 = vpop.f32.mrf.mxu2 }
 0x52b   :  { %v1401_v56 = vpack.c.bf16 %v1291_v54, %v1291_v54  ;;  %v1402_v30 = vpack.c.bf16 %v1313_v57, %v1313_v57 }
 0x52d   :  { %v1433_v58 = vunpack.c.l.b16 %v1401_v56  ;;  %v1434_v5 = vunpack.c.l.b16 %v1402_v30 }
 0x52f   :  { %v1442_v8 = vrot.slane %v1433_v58, 5  ;;  %v1444_v12 = vrot.slane %v1434_v5, 4 }
 0x531   :  { %v1443_v36 = vsel %vm913_vm10, %v1442_v8, %v1441_v11 }
 0x532   :  { %v1335_v0 = vpop.f32.mrf.mxu3  ;;  %v1357_v32 = vpop.f32.mrf.mxu2  ;;  %v1445_v15 = vsel %vm915_vm11, %v1444_v12, %v1443_v36 }
 0x533   :  { %v1403_v46 = vpack.c.bf16 %v1335_v0, %v1335_v0  ;;  %v1404_v3 = vpack.c.bf16 %v1357_v32, %v1357_v32 }
 0x535   :  { %v1435_v9 = vunpack.c.l.b16 %v1403_v46  ;;  %v1436_v51 = vunpack.c.l.b16 %v1404_v3 }
 0x537   :  { %v1446_v60 = vrot.slane %v1435_v9, 3  ;;  %v1448_v16 = vrot.slane %v1436_v51, 2 }
 0x539   :  { %v1447_v17 = vsel %vm2747_vm15, %v1446_v60, %v1445_v15 }
 0x53a   :  { %v1379_v13 = vpop.f32.mrf.mxu3  ;;  %v1449_v40 = vsel %vm2748_vm1, %v1448_v16, %v1447_v17 }
 0x53b   :  { %v1405_v14 = vpack.c.bf16 %v1379_v13, %v1379_v13 }
 0x53d   :  { %v1437_v59 = vunpack.c.l.b16 %v1405_v14 }
 0x53f   :  { %v1450_v18 = vrot.slane %v1437_v59, 1 }
 0x541   :  { %v1451_v20 = vsel %vm2749_vm2, %v1450_v18, %v1449_v40 }
 0x542   :  { %v1452_v21 = vpack.c.b16 %v1451_v20, %v1451_v20 }
 0x544   :  { %1510 = vmatmul.bf16.vlgmr.msra.gmra.mxu0 %v1452_v21 }
 0x5c1   :  { %v1511_v23 = vpop.f32.mrf.mxu0 }
 0x5c2   :  { %v1573_v24 = vadd.f32 %v2431_v2, %v1511_v23 }
 0x5c4   :  { %v1580_v22 = vadd.f32 %v1988_v61, %v1573_v24 }
 0x5c6   :  { %2031 = vtanh.f32 %v1580_v22 }
 0x5c9   :  { %v1513_v25 = vpop.f32.mrf.mxu0 }
 0x5cc   :  { %v2032_v7 = vpop.eup %2031 }
 0x5cd   :  { %v1582_v26 = vpack.c.bf16 %v2032_v7, %v2032_v7 }
 0x5cf   :  { %1583 = vst [vmem:[%s2725_s20] sm:$0xf] %v1582_v26 }
 0x5d0   :  { %1596 = vsyncpa [#allocation3], 1 }
 0x5d1   :  { %1597 = vsyncpa [#allocation5], 1 }
 0x5d2   :  { %1598 = vsyncpa [#allocation8], 1 }
 0x5d3   :  { %1599 = vsyncpa [#allocation11], 1 }

</bundles_post_ra>
